<compile_context>
chip_gen: v7x
topology: tpu7x:2x2x1
jax: 0.10.0
libtpu: 0.0.40
codegen_flags: <defaults>
</compile_context>

<pallas_src>
import functools
import math

import jax
import jax.numpy as jnp
import numpy as np
from jax import lax
from jax.experimental import pallas as pl
from jax.experimental.pallas import tpu as pltpu

LN_EPS = 1e-5
_LANE = 128


def _round_up(x, m):
    return (x + m - 1) // m * m


def _layernorm_padded(x, gamma, beta, inv_n):
    # x: (R, Ep) f32 with zeros in the padded lanes; gamma/beta zero-padded.
    # Sums run over all Ep lanes but padded lanes of x are zero, so dividing by
    # the TRUE feature count (inv_n = 1/E) gives the exact statistics. The
    # E[x^2] - mean^2 form avoids the (0 - mean)^2 contamination a two-pass
    # formula would pick up on padded lanes.
    mean = jnp.sum(x, axis=-1, keepdims=True) * inv_n
    ms = jnp.sum(x * x, axis=-1, keepdims=True) * inv_n
    var = ms - mean * mean
    return (x - mean) * lax.rsqrt(var + LN_EPS) * gamma + beta


def _gelu_exact(x):
    # PyTorch nn.GELU() default: exact erf-based GELU (f32).
    return 0.5 * x * (1.0 + lax.erf(x * (1.0 / math.sqrt(2.0))))


def _encoder_layer_kernel(
    x_ref,                       # (Bb, S, Ep)
    g1_ref, b1_ref,              # LayerNorm1 (1, Ep)  (zero-padded)
    wqkv_ref, bqkv_ref,          # fused QKV: (Ep, 3Ep) bf16, (1, 3Ep) f32
    wo_ref, bo_ref,              # out proj:  (Ep, Ep) bf16,  (1, Ep)  f32
    g2_ref, b2_ref,              # LayerNorm2 (1, Ep)
    w1_ref, bb1_ref,             # MLP fc1:   (Ep, Mp) bf16,  (1, Mp)  f32
    w2_ref, bb2_ref,             # MLP fc2:   (Mp, Ep) bf16,  (1, Ep)  f32
    o_ref,                       # (Bb, S, Ep)
    *, num_heads, d_pad, e_true,
):
    Bb, S, Ep = x_ref.shape
    H = num_heads
    R = Bb * S
    mxu = jnp.bfloat16
    inv_e = 1.0 / e_true

    x = x_ref[...].astype(jnp.float32).reshape(R, Ep)

    # ---- LayerNorm 1 (f32) ----
    ln1 = _layernorm_padded(x, g1_ref[...], b1_ref[...], inv_e)

    # ---- fused QKV projection: one MXU weight push, one bias pass ----
    qkv = jnp.dot(ln1.astype(mxu), wqkv_ref[...],
                  preferred_element_type=jnp.float32) + bqkv_ref[...]
    qkv = qkv.astype(mxu)                      # cast BEFORE the head relayout
    q = qkv[:, 0 * Ep:1 * Ep]                  # 128-aligned lane slices
    k = qkv[:, 1 * Ep:2 * Ep]
    v = qkv[:, 2 * Ep:3 * Ep]

    # ---- head split: single reshape + transpose per tensor (bf16) ----
    def heads(t):
        t = jnp.transpose(t.reshape(Bb, S, H, d_pad), (0, 2, 1, 3))
        return t.reshape(Bb * H, S, d_pad)

    qh, kh, vh = heads(q), heads(k), heads(v)            # (Bb*H, S, Dp)

    # Softmax scale is pre-folded into wq/bq in the wrapper.
    scores = jnp.einsum("gqd,gkd->gqk", qh, kh,
                        preferred_element_type=jnp.float32)   # (Bb*H, S, S) f32
    scores = scores - jnp.max(scores, axis=-1, keepdims=True)
    p = jnp.exp(scores)
    p = p * pl.reciprocal(jnp.sum(p, axis=-1, keepdims=True), approx=True)
    ctx = jnp.einsum("gqk,gkd->gqd", p.astype(mxu), vh,
                     preferred_element_type=jnp.float32)      # (Bb*H, S, Dp)

    # ---- merge heads (bf16 relayout) + output projection ----
    ctx = ctx.astype(mxu).reshape(Bb, H, S, d_pad)
    ctx = jnp.transpose(ctx, (0, 2, 1, 3)).reshape(R, Ep)
    attn = jnp.dot(ctx, wo_ref[...],
                   preferred_element_type=jnp.float32) + bo_ref[...]

    x1 = x + attn                                             # residual 1

    # ---- LayerNorm 2 + MLP ----
    ln2 = _layernorm_padded(x1, g2_ref[...], b2_ref[...], inv_e)
    h1 = jnp.dot(ln2.astype(mxu), w1_ref[...],
                 preferred_element_type=jnp.float32) + bb1_ref[...]    # (R, Mp)
    h1 = _gelu_exact(h1)
    mlp = jnp.dot(h1.astype(mxu), w2_ref[...],
                  preferred_element_type=jnp.float32) + bb2_ref[...]   # (R, Ep)

    o_ref[...] = (x1 + mlp).reshape(Bb, S, Ep).astype(o_ref.dtype)     # residual 2


def transformer_encoder_layer(x, params, num_heads):
    B, S, E = x.shape
    H = num_heads
    D = E // H
    M = params["w1"].shape[0]
    mxu = jnp.bfloat16

    # ---- lane-dense padding: pad per-head D so that Ep = H*Dp is a multiple
    #      of 128; pad the MLP hidden dim to a multiple of 128. ----
    Dp = _round_up(D, _LANE // math.gcd(H, _LANE))
    Ep = H * Dp
    Mp = _round_up(M, _LANE)

    def pad_cols(a, n):
        return jnp.pad(a, [(0, 0)] * (a.ndim - 1) + [(0, n - a.shape[-1])])

    def scatter_head_cols(w, d_from, d_to):
        # (..., H*d_from) -> (..., H*d_to): zero-fill inside each head slot.
        lead = w.shape[:-1]
        w = w.reshape(lead + (H, d_from))
        w = jnp.pad(w, [(0, 0)] * len(lead) + [(0, 0), (0, d_to - d_from)])
        return w.reshape(lead + (H * d_to,))

    def scatter_head_rows(w, d_from, d_to):
        # (H*d_from, C) -> (H*d_to, C): zero-fill inside each head slot.
        C = w.shape[-1]
        w = w.reshape(H, d_from, C)
        w = jnp.pad(w, [(0, 0), (0, d_to - d_from), (0, 0)])
        return w.reshape(H * d_to, C)

    w_in = params["w_in"]                       # (3E, E) torch (out, in) layout
    b_in = params["b_in"]                       # (1, 3E)
    scale = 1.0 / math.sqrt(D)                  # folded into Q weight/bias

    def prep_qkv(w, b, s):
        wt = (w * s).T                                    # (E_in, E_out)
        wt = scatter_head_cols(wt, D, Dp)                 # out cols per-head pad
        wt = jnp.pad(wt, ((0, Ep - E), (0, 0)))           # in rows pad
        return wt, scatter_head_cols(b * s, D, Dp)

    wq_p, bq_p = prep_qkv(w_in[0 * E:1 * E], b_in[:, 0 * E:1 * E], scale)
    wk_p, bk_p = prep_qkv(w_in[1 * E:2 * E], b_in[:, 1 * E:2 * E], 1.0)
    wv_p, bv_p = prep_qkv(w_in[2 * E:3 * E], b_in[:, 2 * E:3 * E], 1.0)
    w_qkv = jnp.concatenate([wq_p, wk_p, wv_p], axis=1).astype(mxu)   # (Ep, 3Ep)
    b_qkv = jnp.concatenate([bq_p, bk_p, bv_p], axis=1)               # (1, 3Ep) f32

    wo_p = scatter_head_rows(params["w_o"].T, D, Dp)                  # (Ep, E)
    wo_p = pad_cols(wo_p, Ep).astype(mxu)                             # (Ep, Ep)
    bo_p = pad_cols(params["b_o"], Ep)

    # gamma/beta zero-padded so padded lanes stay exactly zero after LN.
    g1_p = pad_cols(params["g1"], Ep); b1_p = pad_cols(params["b1"], Ep)
    g2_p = pad_cols(params["g2"], Ep); b2_p = pad_cols(params["b2"], Ep)

    w1_p = jnp.pad(params["w1"].T, ((0, Ep - E), (0, Mp - M))).astype(mxu)  # (Ep, Mp)
    bb1_p = pad_cols(params["bb1"], Mp)
    w2_p = jnp.pad(params["w2"].T, ((0, Mp - M), (0, Ep - E))).astype(mxu)  # (Mp, Ep)
    bb2_p = pad_cols(params["bb2"], Ep)

    x_p = pad_cols(x, Ep)                                             # (B, S, Ep)

    # ---- batch blocking: fill the MXU M-dim (target ~256 rows) ----
    rows_target = 256
    Bb = max(1, min(B, rows_target // max(S, 1)))
    while B % Bb:
        Bb -= 1
    grid = (B // Bb,)

    kernel = functools.partial(_encoder_layer_kernel,
                               num_heads=H, d_pad=Dp, e_true=E)

    def rep(shape):
        # grid-invariant full-array block (weights / biases)
        return pl.BlockSpec(shape, lambda b, _s=len(shape): (0,) * _s)

    in_specs = [
        pl.BlockSpec((Bb, S, Ep), lambda b: (b, 0, 0)),   # x block
        rep((1, Ep)), rep((1, Ep)),                       # ln1 gamma/beta
        rep((Ep, 3 * Ep)), rep((1, 3 * Ep)),              # fused qkv
        rep((Ep, Ep)), rep((1, Ep)),                      # out proj
        rep((1, Ep)), rep((1, Ep)),                       # ln2 gamma/beta
        rep((Ep, Mp)), rep((1, Mp)),                      # mlp fc1
        rep((Mp, Ep)), rep((1, Ep)),                      # mlp fc2
    ]

    # Advisory cost estimate so XLA schedules neighbours around the kernel.
    flops = int(2 * B * S * Ep * 3 * Ep          # qkv proj
                + 4 * B * H * S * S * Dp         # scores + p@v
                + 2 * B * S * Ep * Ep            # out proj
                + 4 * B * S * Ep * Mp)           # mlp
    transcendentals = int(B * H * S * S + B * S * Mp)
    weight_bytes = sum(int(np.prod(a.shape)) * a.dtype.itemsize for a in
                       (w_qkv, b_qkv, wo_p, bo_p, g1_p, b1_p, g2_p, b2_p,
                        w1_p, bb1_p, w2_p, bb2_p))
    bytes_accessed = int(2 * B * S * Ep * 4 + weight_bytes)
    cost = pl.CostEstimate(flops=flops, transcendentals=transcendentals,
                           bytes_accessed=bytes_accessed)

    # VMEM: 64 MiB is fine on v5e/v6e (128 MiB physical); cap to 3/4 of the
    # physical capacity so the same code is safe on v7x (64 MiB physical).
    vmem_limit = 64 * 1024 * 1024
    try:
        cap = getattr(pltpu.get_tpu_info(), "vmem_capacity_bytes", None)
        if cap:
            vmem_limit = min(vmem_limit, int(cap) * 3 // 4)
    except Exception:
        pass

    out_p = pl.pallas_call(
        kernel,
        out_shape=jax.ShapeDtypeStruct((B, S, Ep), x.dtype),
        grid_spec=pltpu.PrefetchScalarGridSpec(
            num_scalar_prefetch=0,
            grid=grid,
            in_specs=in_specs,
            out_specs=pl.BlockSpec((Bb, S, Ep), lambda b: (b, 0, 0)),
        ),
        compiler_params=pltpu.CompilerParams(
            dimension_semantics=("parallel",),
            vmem_limit_bytes=vmem_limit,
        ),
        cost_estimate=cost,
    )(
        x_p,
        g1_p, b1_p,
        w_qkv, b_qkv,
        wo_p, bo_p,
        g2_p, b2_p,
        w1_p, bb1_p,
        w2_p, bb2_p,
    )
    return out_p[..., :E]


def _reference(x, params, num_heads):
    """Pure-JAX f32 reference (eval mode) mirroring the PyTorch module."""
    B, S, E = x.shape
    H, D = num_heads, E // num_heads
    scale = 1.0 / math.sqrt(D)

    def ln(v, g, b):
        m = jnp.mean(v, axis=-1, keepdims=True)
        var = jnp.mean((v - m) ** 2, axis=-1, keepdims=True)
        return (v - m) / jnp.sqrt(var + LN_EPS) * g + b

    ln1 = ln(x, params["g1"], params["b1"])
    qkv = ln1 @ params["w_in"].T + params["b_in"]
    q, k, v = jnp.split(qkv, 3, axis=-1)
    q = q.reshape(B, S, H, D).transpose(0, 2, 1, 3)
    k = k.reshape(B, S, H, D).transpose(0, 2, 1, 3)
    v = v.reshape(B, S, H, D).transpose(0, 2, 1, 3)
    s = jnp.einsum("bhqd,bhkd->bhqk", q, k) * scale
    p = jax.nn.softmax(s, axis=-1)
    a = jnp.einsum("bhqk,bhkd->bhqd", p, v).transpose(0, 2, 1, 3).reshape(B, S, E)
    a = a @ params["w_o"].T + params["b_o"]
    x1 = x + a
    ln2 = ln(x1, params["g2"], params["b2"])
    h1 = ln2 @ params["w1"].T + params["bb1"]
    h1 = 0.5 * h1 * (1.0 + lax.erf(h1 / math.sqrt(2.0)))
    mlp = h1 @ params["w2"].T + params["bb2"]
    return x1 + mlp


if __name__ == "__main__":
    B, S, E = 2, 8, 32
    num_heads = 4
    mlp_dim = 64

    key = jax.random.PRNGKey(0)
    ks = jax.random.split(key, 8)

    params = {
        "g1": jnp.ones((1, E), jnp.float32),
        "b1": jnp.zeros((1, E), jnp.float32),
        "w_in": 0.05 * jax.random.normal(ks[0], (3 * E, E), jnp.float32),
        "b_in": 0.01 * jax.random.normal(ks[1], (1, 3 * E), jnp.float32),
        "w_o": 0.05 * jax.random.normal(ks[2], (E, E), jnp.float32),
        "b_o": 0.01 * jax.random.normal(ks[3], (1, E), jnp.float32),
        "g2": jnp.ones((1, E), jnp.float32),
        "b2": jnp.zeros((1, E), jnp.float32),
        "w1": 0.05 * jax.random.normal(ks[4], (mlp_dim, E), jnp.float32),
        "bb1": 0.01 * jax.random.normal(ks[5], (1, mlp_dim), jnp.float32),
        "w2": 0.05 * jax.random.normal(ks[6], (E, mlp_dim), jnp.float32),
        "bb2": 0.01 * jax.random.normal(ks[7], (1, E), jnp.float32),
    }

    x = jax.random.normal(jax.random.PRNGKey(42), (B, S, E), jnp.float32)

    out = transformer_encoder_layer(x, params, num_heads)
    out = jax.block_until_ready(out)

    ref = jax.block_until_ready(_reference(x, params, num_heads))
    assert out.shape == (B, S, E)
    # bf16 MXU inputs (f32 accumulation) + approx reciprocal -> ~1e-2-level
    # error vs the all-f32 reference.
    np.testing.assert_allclose(np.asarray(out), np.asarray(ref), rtol=2e-2, atol=2e-2)

    print("KERNEL_OK")
</pallas_src>

<mosaic_0001>
module attributes {stable_mosaic.version = 11 : i64} {
  func.func @_encoder_layer_kernel(%arg0: i32, %arg1: memref<2x8x128xf32, #tpu.memory_space<vmem>>, %arg2: memref<1x128xf32, #tpu.memory_space<vmem>>, %arg3: memref<1x128xf32, #tpu.memory_space<vmem>>, %arg4: memref<128x384xbf16, #tpu.memory_space<vmem>>, %arg5: memref<1x384xf32, #tpu.memory_space<vmem>>, %arg6: memref<128x128xbf16, #tpu.memory_space<vmem>>, %arg7: memref<1x128xf32, #tpu.memory_space<vmem>>, %arg8: memref<1x128xf32, #tpu.memory_space<vmem>>, %arg9: memref<1x128xf32, #tpu.memory_space<vmem>>, %arg10: memref<128x128xbf16, #tpu.memory_space<vmem>>, %arg11: memref<1x128xf32, #tpu.memory_space<vmem>>, %arg12: memref<128x128xbf16, #tpu.memory_space<vmem>>, %arg13: memref<1x128xf32, #tpu.memory_space<vmem>>, %arg14: memref<2x8x128xf32, #tpu.memory_space<vmem>>) attributes {dimension_semantics = [#tpu.dimension_semantics<parallel>], iteration_bounds = array<i64: 1>, scalar_prefetch = 0 : i64, scratch_operands = 0 : i64, tpu.core_type = #tpu.core_type<tc>, window_params = [{transform_indices = @transform_0, window_bounds = array<i64: 2, 8, 128>}, {pipeline_mode = #tpu.pipeline_mode<synchronous>, transform_indices = @transform_1, window_bounds = array<i64: 1, 128>}, {pipeline_mode = #tpu.pipeline_mode<synchronous>, transform_indices = @transform_2, window_bounds = array<i64: 1, 128>}, {pipeline_mode = #tpu.pipeline_mode<synchronous>, transform_indices = @transform_3, window_bounds = array<i64: 128, 384>}, {pipeline_mode = #tpu.pipeline_mode<synchronous>, transform_indices = @transform_4, window_bounds = array<i64: 1, 384>}, {pipeline_mode = #tpu.pipeline_mode<synchronous>, transform_indices = @transform_5, window_bounds = array<i64: 128, 128>}, {pipeline_mode = #tpu.pipeline_mode<synchronous>, transform_indices = @transform_6, window_bounds = array<i64: 1, 128>}, {pipeline_mode = #tpu.pipeline_mode<synchronous>, transform_indices = @transform_7, window_bounds = array<i64: 1, 128>}, {pipeline_mode = #tpu.pipeline_mode<synchronous>, transform_indices = @transform_8, window_bounds = array<i64: 1, 128>}, {pipeline_mode = #tpu.pipeline_mode<synchronous>, transform_indices = @transform_9, window_bounds = array<i64: 128, 128>}, {pipeline_mode = #tpu.pipeline_mode<synchronous>, transform_indices = @transform_10, window_bounds = array<i64: 1, 128>}, {pipeline_mode = #tpu.pipeline_mode<synchronous>, transform_indices = @transform_11, window_bounds = array<i64: 128, 128>}, {pipeline_mode = #tpu.pipeline_mode<synchronous>, transform_indices = @transform_12, window_bounds = array<i64: 1, 128>}, {transform_indices = @transform_13, window_bounds = array<i64: 2, 8, 128>}]} {
    %c0 = arith.constant 0 : index
    %c0_0 = arith.constant 0 : index
    %c0_1 = arith.constant 0 : index
    %0 = vector.load %arg1[%c0, %c0_0, %c0_1] : memref<2x8x128xf32, #tpu.memory_space<vmem>>, vector<2x8x128xf32>
    %1 = vector.shape_cast %0 : vector<2x8x128xf32> to vector<16x128xf32>
    %c0_2 = arith.constant 0 : index
    %c0_3 = arith.constant 0 : index
    %2 = vector.load %arg2[%c0_2, %c0_3] : memref<1x128xf32, #tpu.memory_space<vmem>>, vector<1x128xf32>
    %c0_4 = arith.constant 0 : index
    %c0_5 = arith.constant 0 : index
    %3 = vector.load %arg3[%c0_4, %c0_5] : memref<1x128xf32, #tpu.memory_space<vmem>>, vector<1x128xf32>
    %cst = arith.constant dense<0.000000e+00> : vector<16xf32>
    %4 = vector.multi_reduction <add>, %1, %cst [1] : vector<16x128xf32> to vector<16xf32>
    %5 = vector.shape_cast %4 : vector<16xf32> to vector<16x1xf32>
    %cst_6 = arith.constant 3.125000e-02 : f32
    %6 = vector.broadcast %cst_6 : f32 to vector<16x1xf32>
    %7 = arith.mulf %5, %6 : vector<16x1xf32>
    %8 = arith.mulf %1, %1 : vector<16x128xf32>
    %cst_7 = arith.constant dense<0.000000e+00> : vector<16xf32>
    %9 = vector.multi_reduction <add>, %8, %cst_7 [1] : vector<16x128xf32> to vector<16xf32>
    %10 = vector.shape_cast %9 : vector<16xf32> to vector<16x1xf32>
    %cst_8 = arith.constant 3.125000e-02 : f32
    %11 = vector.broadcast %cst_8 : f32 to vector<16x1xf32>
    %12 = arith.mulf %10, %11 : vector<16x1xf32>
    %13 = arith.mulf %7, %7 : vector<16x1xf32>
    %14 = arith.subf %12, %13 : vector<16x1xf32>
    %15 = vector.broadcast %7 : vector<16x1xf32> to vector<16x128xf32>
    %16 = arith.subf %1, %15 : vector<16x128xf32>
    %cst_9 = arith.constant 9.99999974E-6 : f32
    %17 = vector.broadcast %cst_9 : f32 to vector<16x1xf32>
    %18 = arith.addf %14, %17 : vector<16x1xf32>
    %19 = math.rsqrt %18 : vector<16x1xf32>
    %20 = vector.broadcast %19 : vector<16x1xf32> to vector<16x128xf32>
    %21 = arith.mulf %16, %20 : vector<16x128xf32>
    %22 = vector.broadcast %2 : vector<1x128xf32> to vector<16x128xf32>
    %23 = arith.mulf %21, %22 : vector<16x128xf32>
    %24 = vector.broadcast %3 : vector<1x128xf32> to vector<16x128xf32>
    %25 = arith.addf %23, %24 : vector<16x128xf32>
    %26 = arith.truncf %25 : vector<16x128xf32> to vector<16x128xbf16>
    %c0_10 = arith.constant 0 : index
    %c0_11 = arith.constant 0 : index
    %27 = vector.load %arg4[%c0_10, %c0_11] : memref<128x384xbf16, #tpu.memory_space<vmem>>, vector<128x384xbf16>
    %cst_12 = arith.constant dense<0.000000e+00> : vector<16x384xf32>
    %28 = tpu.matmul %26, %27, %cst_12 {dimension_numbers = #tpu.dot_dimension_numbers<[1], [0], [0], [1], [0, 0, 1, 1], [], []>} : vector<16x128xbf16>, vector<128x384xbf16>, vector<16x384xf32> -> vector<16x384xf32>
    %c0_13 = arith.constant 0 : index
    %c0_14 = arith.constant 0 : index
    %29 = vector.load %arg5[%c0_13, %c0_14] : memref<1x384xf32, #tpu.memory_space<vmem>>, vector<1x384xf32>
    %30 = vector.broadcast %29 : vector<1x384xf32> to vector<16x384xf32>
    %31 = arith.addf %28, %30 : vector<16x384xf32>
    %32 = arith.truncf %31 : vector<16x384xf32> to vector<16x384xbf16>
    %33 = vector.extract_strided_slice %32 {offsets = [0, 0], sizes = [16, 128], strides = [1, 1]} : vector<16x384xbf16> to vector<16x128xbf16>
    %34 = vector.extract_strided_slice %32 {offsets = [0, 128], sizes = [16, 128], strides = [1, 1]} : vector<16x384xbf16> to vector<16x128xbf16>
    %35 = vector.extract_strided_slice %32 {offsets = [0, 256], sizes = [16, 128], strides = [1, 1]} : vector<16x384xbf16> to vector<16x128xbf16>
    %36 = vector.shape_cast %33 : vector<16x128xbf16> to vector<2x8x4x32xbf16>
    %37 = tpu.transpose %36, [0, 2, 1, 3] : vector<2x8x4x32xbf16> -> vector<2x4x8x32xbf16>
    %38 = vector.shape_cast %37 : vector<2x4x8x32xbf16> to vector<8x8x32xbf16>
    %39 = vector.shape_cast %34 : vector<16x128xbf16> to vector<2x8x4x32xbf16>
    %40 = tpu.transpose %39, [0, 2, 1, 3] : vector<2x8x4x32xbf16> -> vector<2x4x8x32xbf16>
    %41 = vector.shape_cast %40 : vector<2x4x8x32xbf16> to vector<8x8x32xbf16>
    %42 = vector.shape_cast %35 : vector<16x128xbf16> to vector<2x8x4x32xbf16>
    %43 = tpu.transpose %42, [0, 2, 1, 3] : vector<2x8x4x32xbf16> -> vector<2x4x8x32xbf16>
    %44 = vector.shape_cast %43 : vector<2x4x8x32xbf16> to vector<8x8x32xbf16>
    "tpu.trace_start"() <{level = 10 : i32, message = "gqd,gkd->gqk"}> : () -> ()
    %cst_15 = arith.constant dense<0.000000e+00> : vector<8x8x8xf32>
    %45 = tpu.matmul %38, %41, %cst_15 {dimension_numbers = #tpu.dot_dimension_numbers<[2], [2], [1], [1], [0, 0, 0, 1, 1, 1], [0], [0]>} : vector<8x8x32xbf16>, vector<8x8x32xbf16>, vector<8x8x8xf32> -> vector<8x8x8xf32>
    "tpu.trace_stop"() : () -> ()
    %cst_16 = arith.constant dense<0xFF800000> : vector<8x8xf32>
    %46 = vector.multi_reduction <maximumf>, %45, %cst_16 [2] : vector<8x8x8xf32> to vector<8x8xf32>
    %47 = vector.shape_cast %46 : vector<8x8xf32> to vector<8x8x1xf32>
    %48 = vector.broadcast %47 : vector<8x8x1xf32> to vector<8x8x8xf32>
    %49 = arith.subf %45, %48 : vector<8x8x8xf32>
    %50 = math.exp %49 : vector<8x8x8xf32>
    %cst_17 = arith.constant dense<0.000000e+00> : vector<8x8xf32>
    %51 = vector.multi_reduction <add>, %50, %cst_17 [2] : vector<8x8x8xf32> to vector<8x8xf32>
    %52 = vector.shape_cast %51 : vector<8x8xf32> to vector<8x8x1xf32>
    %53 = tpu.reciprocal %52 {approx = true} : vector<8x8x1xf32> -> vector<8x8x1xf32>
    %54 = vector.broadcast %53 : vector<8x8x1xf32> to vector<8x8x8xf32>
    %55 = arith.mulf %50, %54 : vector<8x8x8xf32>
    %56 = arith.truncf %55 : vector<8x8x8xf32> to vector<8x8x8xbf16>
    "tpu.trace_start"() <{level = 10 : i32, message = "gqk,gkd->gqd"}> : () -> ()
    %cst_18 = arith.constant dense<0.000000e+00> : vector<8x8x32xf32>
    %57 = tpu.matmul %56, %44, %cst_18 {dimension_numbers = #tpu.dot_dimension_numbers<[2], [1], [1], [2], [0, 0, 0, 1, 1, 2], [0], [0]>} : vector<8x8x8xbf16>, vector<8x8x32xbf16>, vector<8x8x32xf32> -> vector<8x8x32xf32>
    "tpu.trace_stop"() : () -> ()
    %58 = arith.truncf %57 : vector<8x8x32xf32> to vector<8x8x32xbf16>
    %59 = vector.shape_cast %58 : vector<8x8x32xbf16> to vector<2x4x8x32xbf16>
    %60 = tpu.transpose %59, [0, 2, 1, 3] : vector<2x4x8x32xbf16> -> vector<2x8x4x32xbf16>
    %61 = vector.shape_cast %60 : vector<2x8x4x32xbf16> to vector<16x128xbf16>
    %c0_19 = arith.constant 0 : index
    %c0_20 = arith.constant 0 : index
    %62 = vector.load %arg6[%c0_19, %c0_20] : memref<128x128xbf16, #tpu.memory_space<vmem>>, vector<128x128xbf16>
    %cst_21 = arith.constant dense<0.000000e+00> : vector<16x128xf32>
    %63 = tpu.matmul %61, %62, %cst_21 {dimension_numbers = #tpu.dot_dimension_numbers<[1], [0], [0], [1], [0, 0, 1, 1], [], []>} : vector<16x128xbf16>, vector<128x128xbf16>, vector<16x128xf32> -> vector<16x128xf32>
    %c0_22 = arith.constant 0 : index
    %c0_23 = arith.constant 0 : index
    %64 = vector.load %arg7[%c0_22, %c0_23] : memref<1x128xf32, #tpu.memory_space<vmem>>, vector<1x128xf32>
    %65 = vector.broadcast %64 : vector<1x128xf32> to vector<16x128xf32>
    %66 = arith.addf %63, %65 : vector<16x128xf32>
    %67 = arith.addf %1, %66 : vector<16x128xf32>
    %c0_24 = arith.constant 0 : index
    %c0_25 = arith.constant 0 : index
    %68 = vector.load %arg8[%c0_24, %c0_25] : memref<1x128xf32, #tpu.memory_space<vmem>>, vector<1x128xf32>
    %c0_26 = arith.constant 0 : index
    %c0_27 = arith.constant 0 : index
    %69 = vector.load %arg9[%c0_26, %c0_27] : memref<1x128xf32, #tpu.memory_space<vmem>>, vector<1x128xf32>
    %cst_28 = arith.constant dense<0.000000e+00> : vector<16xf32>
    %70 = vector.multi_reduction <add>, %67, %cst_28 [1] : vector<16x128xf32> to vector<16xf32>
    %71 = vector.shape_cast %70 : vector<16xf32> to vector<16x1xf32>
    %cst_29 = arith.constant 3.125000e-02 : f32
    %72 = vector.broadcast %cst_29 : f32 to vector<16x1xf32>
    %73 = arith.mulf %71, %72 : vector<16x1xf32>
    %74 = arith.mulf %67, %67 : vector<16x128xf32>
    %cst_30 = arith.constant dense<0.000000e+00> : vector<16xf32>
    %75 = vector.multi_reduction <add>, %74, %cst_30 [1] : vector<16x128xf32> to vector<16xf32>
    %76 = vector.shape_cast %75 : vector<16xf32> to vector<16x1xf32>
    %cst_31 = arith.constant 3.125000e-02 : f32
    %77 = vector.broadcast %cst_31 : f32 to vector<16x1xf32>
    %78 = arith.mulf %76, %77 : vector<16x1xf32>
    %79 = arith.mulf %73, %73 : vector<16x1xf32>
    %80 = arith.subf %78, %79 : vector<16x1xf32>
    %81 = vector.broadcast %73 : vector<16x1xf32> to vector<16x128xf32>
    %82 = arith.subf %67, %81 : vector<16x128xf32>
    %cst_32 = arith.constant 9.99999974E-6 : f32
    %83 = vector.broadcast %cst_32 : f32 to vector<16x1xf32>
    %84 = arith.addf %80, %83 : vector<16x1xf32>
    %85 = math.rsqrt %84 : vector<16x1xf32>
    %86 = vector.broadcast %85 : vector<16x1xf32> to vector<16x128xf32>
    %87 = arith.mulf %82, %86 : vector<16x128xf32>
    %88 = vector.broadcast %68 : vector<1x128xf32> to vector<16x128xf32>
    %89 = arith.mulf %87, %88 : vector<16x128xf32>
    %90 = vector.broadcast %69 : vector<1x128xf32> to vector<16x128xf32>
    %91 = arith.addf %89, %90 : vector<16x128xf32>
    %92 = arith.truncf %91 : vector<16x128xf32> to vector<16x128xbf16>
    %c0_33 = arith.constant 0 : index
    %c0_34 = arith.constant 0 : index
    %93 = vector.load %arg10[%c0_33, %c0_34] : memref<128x128xbf16, #tpu.memory_space<vmem>>, vector<128x128xbf16>
    %cst_35 = arith.constant dense<0.000000e+00> : vector<16x128xf32>
    %94 = tpu.matmul %92, %93, %cst_35 {dimension_numbers = #tpu.dot_dimension_numbers<[1], [0], [0], [1], [0, 0, 1, 1], [], []>} : vector<16x128xbf16>, vector<128x128xbf16>, vector<16x128xf32> -> vector<16x128xf32>
    %c0_36 = arith.constant 0 : index
    %c0_37 = arith.constant 0 : index
    %95 = vector.load %arg11[%c0_36, %c0_37] : memref<1x128xf32, #tpu.memory_space<vmem>>, vector<1x128xf32>
    %96 = vector.broadcast %95 : vector<1x128xf32> to vector<16x128xf32>
    %97 = arith.addf %94, %96 : vector<16x128xf32>
    %cst_38 = arith.constant 5.000000e-01 : f32
    %98 = vector.broadcast %cst_38 : f32 to vector<16x128xf32>
    %99 = arith.mulf %98, %97 : vector<16x128xf32>
    %cst_39 = arith.constant 0.707106769 : f32
    %100 = vector.broadcast %cst_39 : f32 to vector<16x128xf32>
    %101 = arith.mulf %97, %100 : vector<16x128xf32>
    %102 = math.erf %101 : vector<16x128xf32>
    %cst_40 = arith.constant 1.000000e+00 : f32
    %103 = vector.broadcast %cst_40 : f32 to vector<16x128xf32>
    %104 = arith.addf %103, %102 : vector<16x128xf32>
    %105 = arith.mulf %99, %104 : vector<16x128xf32>
    %106 = arith.truncf %105 : vector<16x128xf32> to vector<16x128xbf16>
    %c0_41 = arith.constant 0 : index
    %c0_42 = arith.constant 0 : index
    %107 = vector.load %arg12[%c0_41, %c0_42] : memref<128x128xbf16, #tpu.memory_space<vmem>>, vector<128x128xbf16>
    %cst_43 = arith.constant dense<0.000000e+00> : vector<16x128xf32>
    %108 = tpu.matmul %106, %107, %cst_43 {dimension_numbers = #tpu.dot_dimension_numbers<[1], [0], [0], [1], [0, 0, 1, 1], [], []>} : vector<16x128xbf16>, vector<128x128xbf16>, vector<16x128xf32> -> vector<16x128xf32>
    %c0_44 = arith.constant 0 : index
    %c0_45 = arith.constant 0 : index
    %109 = vector.load %arg13[%c0_44, %c0_45] : memref<1x128xf32, #tpu.memory_space<vmem>>, vector<1x128xf32>
    %110 = vector.broadcast %109 : vector<1x128xf32> to vector<16x128xf32>
    %111 = arith.addf %108, %110 : vector<16x128xf32>
    %112 = arith.addf %67, %111 : vector<16x128xf32>
    %113 = vector.shape_cast %112 : vector<16x128xf32> to vector<2x8x128xf32>
    %c0_46 = arith.constant 0 : index
    %c0_47 = arith.constant 0 : index
    %c0_48 = arith.constant 0 : index
    %114 = vector.load %arg14[%c0_46, %c0_47, %c0_48] : memref<2x8x128xf32, #tpu.memory_space<vmem>>, vector<2x8x128xf32>
    tpu.vector_store %arg14[%c0_46, %c0_47, %c0_48], %113 {strides = array<i32>} : memref<2x8x128xf32, #tpu.memory_space<vmem>>, vector<2x8x128xf32>,
    return
  }
  func.func @transform_0(%arg0: i32) -> (i32, i32, i32) {
    %c0_i32 = arith.constant 0 : i32
    %c0_i32_0 = arith.constant 0 : i32
    %c0_i32_1 = arith.constant 0 : i32
    return %arg0, %c0_i32, %c0_i32_0 : i32, i32, i32
  }
  func.func @transform_1(%arg0: i32) -> (i32, i32) {
    %c0_i32 = arith.constant 0 : i32
    %c0_i32_0 = arith.constant 0 : i32
    %c0_i32_1 = arith.constant 0 : i32
    return %c0_i32, %c0_i32_0 : i32, i32
  }
  func.func @transform_2(%arg0: i32) -> (i32, i32) {
    %c0_i32 = arith.constant 0 : i32
    %c0_i32_0 = arith.constant 0 : i32
    %c0_i32_1 = arith.constant 0 : i32
    return %c0_i32, %c0_i32_0 : i32, i32
  }
  func.func @transform_3(%arg0: i32) -> (i32, i32) {
    %c0_i32 = arith.constant 0 : i32
    %c0_i32_0 = arith.constant 0 : i32
    %c0_i32_1 = arith.constant 0 : i32
    return %c0_i32, %c0_i32_0 : i32, i32
  }
  func.func @transform_4(%arg0: i32) -> (i32, i32) {
    %c0_i32 = arith.constant 0 : i32
    %c0_i32_0 = arith.constant 0 : i32
    %c0_i32_1 = arith.constant 0 : i32
    return %c0_i32, %c0_i32_0 : i32, i32
  }
  func.func @transform_5(%arg0: i32) -> (i32, i32) {
    %c0_i32 = arith.constant 0 : i32
    %c0_i32_0 = arith.constant 0 : i32
    %c0_i32_1 = arith.constant 0 : i32
    return %c0_i32, %c0_i32_0 : i32, i32
  }
  func.func @transform_6(%arg0: i32) -> (i32, i32) {
    %c0_i32 = arith.constant 0 : i32
    %c0_i32_0 = arith.constant 0 : i32
    %c0_i32_1 = arith.constant 0 : i32
    return %c0_i32, %c0_i32_0 : i32, i32
  }
  func.func @transform_7(%arg0: i32) -> (i32, i32) {
    %c0_i32 = arith.constant 0 : i32
    %c0_i32_0 = arith.constant 0 : i32
    %c0_i32_1 = arith.constant 0 : i32
    return %c0_i32, %c0_i32_0 : i32, i32
  }
  func.func @transform_8(%arg0: i32) -> (i32, i32) {
    %c0_i32 = arith.constant 0 : i32
    %c0_i32_0 = arith.constant 0 : i32
    %c0_i32_1 = arith.constant 0 : i32
    return %c0_i32, %c0_i32_0 : i32, i32
  }
  func.func @transform_9(%arg0: i32) -> (i32, i32) {
    %c0_i32 = arith.constant 0 : i32
    %c0_i32_0 = arith.constant 0 : i32
    %c0_i32_1 = arith.constant 0 : i32
    return %c0_i32, %c0_i32_0 : i32, i32
  }
  func.func @transform_10(%arg0: i32) -> (i32, i32) {
    %c0_i32 = arith.constant 0 : i32
    %c0_i32_0 = arith.constant 0 : i32
    %c0_i32_1 = arith.constant 0 : i32
    return %c0_i32, %c0_i32_0 : i32, i32
  }
  func.func @transform_11(%arg0: i32) -> (i32, i32) {
    %c0_i32 = arith.constant 0 : i32
    %c0_i32_0 = arith.constant 0 : i32
    %c0_i32_1 = arith.constant 0 : i32
    return %c0_i32, %c0_i32_0 : i32, i32
  }
  func.func @transform_12(%arg0: i32) -> (i32, i32) {
    %c0_i32 = arith.constant 0 : i32
    %c0_i32_0 = arith.constant 0 : i32
    %c0_i32_1 = arith.constant 0 : i32
    return %c0_i32, %c0_i32_0 : i32, i32
  }
  func.func @transform_13(%arg0: i32) -> (i32, i32, i32) {
    %c0_i32 = arith.constant 0 : i32
    %c0_i32_0 = arith.constant 0 : i32
    %c0_i32_1 = arith.constant 0 : i32
    return %arg0, %c0_i32, %c0_i32_0 : i32, i32, i32
  }
}

</mosaic_0001>

<bundles_post_ra>
// kernel: tpu_custom_call.1
= control target key start
LH: loop header
LB: loop body
LE: loop exit
PB: predicated region body
PF: predicated region fallthrough
CT: control target
= control target key end

     0   :  { %18 = vsyncpa [#allocation3], 0  ;;  %s4412_s0 = inlined_call_operand.hbm [shape: f32[2,8,128], index: 0, kind: input, shape index: {}]   ;;  %s4413_s1 = inlined_call_operand.hbm [shape: f32[1,128], index: 1, kind: input, shape index: {}]   ;;  %s4414_s2 = inlined_call_operand.hbm [shape: f32[1,128], index: 2, kind: input, shape index: {}]   ;;  %s4415_s3 = inlined_call_operand.hbm [shape: bf16[128,384], index: 3, kind: input, shape index: {}]   ;;  %s4416_s4 = inlined_call_operand.hbm [shape: f32[1,384], index: 4, kind: input, shape index: {}]   ;;  %s4417_s5 = inlined_call_operand.hbm [shape: bf16[128,128], index: 5, kind: input, shape index: {}]   ;;  %s4418_s6 = inlined_call_operand.hbm [shape: f32[1,128], index: 6, kind: input, shape index: {}]   ;;  %s4419_s7 = inlined_call_operand.hbm [shape: f32[1,128], index: 7, kind: input, shape index: {}]   ;;  %s4420_s8 = inlined_call_operand.hbm [shape: f32[1,128], index: 8, kind: input, shape index: {}]   ;;  %s4421_s9 = inlined_call_operand.hbm [shape: bf16[128,128], index: 9, kind: input, shape index: {}]   ;;  %s4422_s10 = inlined_call_operand.hbm [shape: f32[1,128], index: 10, kind: input, shape index: {}]   ;;  %s4423_s11 = inlined_call_operand.hbm [shape: bf16[128,128], index: 11, kind: input, shape index: {}]   ;;  %s4424_s12 = inlined_call_operand.hbm [shape: f32[1,128], index: 12, kind: input, shape index: {}]   ;;  %s4425_s13 = inlined_call_operand.hbm [shape: f32[2,8,128], index: 13, kind: output, shape index: {}]  }
   0x1   :  { %19 = vsyncpa [#allocation6], 0 }
   0x2   :  { %20 = vsyncpa [#allocation9], 0 }
   0x3   :  { %21 = vsyncpa [#allocation12], 0 }
   0x4   :  { %22 = vsyncpa [#allocation15], 0 }
   0x5   :  { %23 = vsyncpa [#allocation18], 0 }
   0x6   :  { %24 = vsyncpa [#allocation21], 0 }
   0x7   :  { %25 = vsyncpa [#allocation4], 0  ;;  %s3724_s25 = smov [#allocation5]   ;;  %s3725_s27 = smov [#allocation8]  }
   0x8   :  { %s44_s26 = sshll.u32 %s3724_s25, 4  ;;  %s63_s28 = sshll.u32 %s3725_s27, 4  ;;  %s45_s26 = int_to_ptr.vmem [resolvable:$true] %s44_s26  ;;  %s3821_s28 = int_to_ptr.vmem [resolvable:$true] %s63_s28 }
   0x9   :  { %s3400_s14 = scalar_lea.hbm %s4413_s1, 16 }
   0xa   :  { %p3401_p0 = scmp.ne.s32.totalorder %s4413_s1, %s3400_s14  ;;  %p3404_p1 = scmp.lt.u32.totalorder %s3400_s14, %s4413_s1 }
   0xc   :  { %p3406_p2 = pnand %p3404_p1, %p3401_p0 }
   0xe   :  { %3409 = shalt.err (!%p3406_p2)
}
   0xf   :  { %s3410_s19 = scalar_lea.vmem %s45_s26, 16  ;;  %s3414_s20 = scalar_lea.vmem %s45_s26, 32 }
  0x10   :  { %p3411_p3 = scmp.ne.s32.totalorder %s45_s26, %s3410_s19  ;;  %p3415_p4 = scmp.lt.s32.totalorder %s45_s26, %s45_s26 }
  0x11   :  { %p3416_p5 = scmp.lt.s32.totalorder %s3414_s20, %s3410_s19 }
  0x13   :  { %p3417_p6 = por %p3416_p5, %p3415_p4 }
  0x15   :  { %p3418_p7 = pnand %p3417_p6, %p3411_p3 }
  0x17   :  { %3421 = shalt.err (!%p3418_p7)
}
  0x18   :  { %47 = dma.hbm_to_vmem [thread:$0]  %s4413_s1, 16, %s45_s26, [#allocation6]  }
  0x19   :  { %s3422_s25 = scalar_lea.hbm %s4415_s3, 3072 }
  0x1a   :  { %p3423_p8 = scmp.ne.s32.totalorder %s4415_s3, %s3422_s25  ;;  %p3426_p9 = scmp.lt.u32.totalorder %s3422_s25, %s4415_s3 }
  0x1c   :  { %p3428_p10 = pnand %p3426_p9, %p3423_p8 }
  0x1e   :  { %3431 = shalt.err (!%p3428_p10)
}
  0x1f   :  { %s3432_s15 = scalar_lea.vmem %s3821_s28, 3072  ;;  %p3437_p12 = scmp.lt.s32.totalorder %s3821_s28, %s3821_s28 }
  0x20   :  { %p3433_p11 = scmp.ne.s32.totalorder %s3821_s28, %s3432_s15  ;;  %p3438_p13 = scmp.lt.s32.totalorder %s3432_s15, %s3432_s15 }
  0x22   :  { %p3439_p0 = por %p3438_p13, %p3437_p12 }
  0x24   :  { %p3440_p1 = pnand %p3439_p0, %p3433_p11 }
  0x26   :  { %3443 = shalt.err (!%p3440_p1)
}
  0x27   :  { %s3726_s1 = smov 192   ;;  %s3727_s26 = smov 12  }
  0x28   :  { %69 = dma.hbm_to_vmem [thread:$0]  %s4415_s3, 3072, %s3821_s28, [#allocation9], %s3726_s1, %s3726_s1, %s3727_s26  }
  0x29   :  { %s3728_s18 = smov [#allocation11]   ;;  %s3444_s22 = scalar_lea.hbm %s4417_s5, 1024 }
  0x2a   :  { %s85_s19 = sshll.u32 %s3728_s18, 4  ;;  %p3445_p2 = scmp.ne.s32.totalorder %s4417_s5, %s3444_s22  ;;  %s86_s19 = int_to_ptr.vmem [resolvable:$true] %s85_s19 }
  0x2b   :  { %p3448_p3 = scmp.lt.u32.totalorder %s3444_s22, %s4417_s5 }
  0x2d   :  { %p3450_p4 = pnand %p3448_p3, %p3445_p2 }
  0x2f   :  { %3453 = shalt.err (!%p3450_p4)
}
  0x30   :  { %s3454_s29 = scalar_lea.vmem %s86_s19, 1024  ;;  %p3459_p6 = scmp.lt.s32.totalorder %s86_s19, %s86_s19 }
  0x31   :  { %p3455_p5 = scmp.ne.s32.totalorder %s86_s19, %s3454_s29  ;;  %p3460_p7 = scmp.lt.s32.totalorder %s3454_s29, %s3454_s29 }
  0x33   :  { %p3461_p8 = por %p3460_p7, %p3459_p6 }
  0x35   :  { %p3462_p9 = pnand %p3461_p8, %p3455_p5 }
  0x37   :  { %3465 = shalt.err (!%p3462_p9)
}
  0x38   :  { %s3729_s3 = smov 64   ;;  %s3730_s28 = smov 4  }
  0x39   :  { %91 = dma.hbm_to_vmem [thread:$0]  %s4417_s5, 1024, %s86_s19, [#allocation12], %s3729_s3, %s3729_s3, %s3730_s28  }
  0x3a   :  { %s3731_s15 = smov [#allocation14]   ;;  %s3732_s26 = smov [#allocation17]  }
  0x3b   :  { %s108_s1 = sshll.u32 %s3731_s15, 4  ;;  %s127_s16 = sshll.u32 %s3732_s26, 4  ;;  %s109_s1 = int_to_ptr.vmem [resolvable:$true] %s108_s1  ;;  %s128_s16 = int_to_ptr.vmem [resolvable:$true] %s127_s16 }
  0x3c   :  { %s3466_s20 = scalar_lea.hbm %s4419_s7, 16 }
  0x3d   :  { %p3467_p10 = scmp.ne.s32.totalorder %s4419_s7, %s3466_s20  ;;  %p3470_p11 = scmp.lt.u32.totalorder %s3466_s20, %s4419_s7 }
  0x3f   :  { %p3472_p12 = pnand %p3470_p11, %p3467_p10 }
  0x41   :  { %3475 = shalt.err (!%p3472_p12)
}
  0x42   :  { %s3476_s5 = scalar_lea.vmem %s109_s1, 16  ;;  %s3480_s19 = scalar_lea.vmem %s109_s1, 32 }
  0x43   :  { %p3477_p13 = scmp.ne.s32.totalorder %s109_s1, %s3476_s5  ;;  %p3481_p0 = scmp.lt.s32.totalorder %s109_s1, %s109_s1 }
  0x44   :  { %p3482_p1 = scmp.lt.s32.totalorder %s3480_s19, %s3476_s5 }
  0x46   :  { %p3483_p2 = por %p3482_p1, %p3481_p0 }
  0x48   :  { %p3484_p3 = pnand %p3483_p2, %p3477_p13 }
  0x4a   :  { %3487 = shalt.err (!%p3484_p3)
}
  0x4b   :  { %111 = dma.hbm_to_vmem [thread:$0]  %s4419_s7, 16, %s109_s1, [#allocation15]  }
  0x4c   :  { %s3488_s14 = scalar_lea.hbm %s4421_s9, 1024 }
  0x4d   :  { %p3489_p4 = scmp.ne.s32.totalorder %s4421_s9, %s3488_s14  ;;  %p3492_p5 = scmp.lt.u32.totalorder %s3488_s14, %s4421_s9 }
  0x4f   :  { %p3494_p6 = pnand %p3492_p5, %p3489_p4 }
  0x51   :  { %3497 = shalt.err (!%p3494_p6)
}
  0x52   :  { %s3498_s20 = scalar_lea.vmem %s128_s16, 1024  ;;  %p3503_p8 = scmp.lt.s32.totalorder %s128_s16, %s128_s16 }
  0x53   :  { %p3499_p7 = scmp.ne.s32.totalorder %s128_s16, %s3498_s20  ;;  %p3504_p9 = scmp.lt.s32.totalorder %s3498_s20, %s3498_s20 }
  0x55   :  { %p3505_p10 = por %p3504_p9, %p3503_p8 }
  0x57   :  { %p3506_p11 = pnand %p3505_p10, %p3499_p7 }
  0x59   :  { %3509 = shalt.err (!%p3506_p11)
}
  0x5a   :  { %133 = dma.hbm_to_vmem [thread:$0]  %s4421_s9, 1024, %s128_s16, [#allocation18], %s3729_s3, %s3729_s3, %s3730_s28  }
  0x5b   :  { %s3733_s21 = smov [#allocation20]   ;;  %s3734_s23 = smov [#allocation2]  }
  0x5c   :  { %s149_s22 = sshll.u32 %s3733_s21, 4  ;;  %s31_s24 = sshll.u32 %s3734_s23, 4  ;;  %s150_s22 = int_to_ptr.vmem [resolvable:$true] %s149_s22  ;;  %s32_s24 = int_to_ptr.vmem [resolvable:$true] %s31_s24 }
  0x5d   :  { %s3510_s25 = scalar_lea.hbm %s4423_s11, 1024 }
  0x5e   :  { %p3511_p12 = scmp.ne.s32.totalorder %s4423_s11, %s3510_s25  ;;  %p3514_p13 = scmp.lt.u32.totalorder %s3510_s25, %s4423_s11 }
  0x60   :  { %p3516_p0 = pnand %p3514_p13, %p3511_p12 }
  0x62   :  { %3519 = shalt.err (!%p3516_p0)
}
  0x63   :  { %s3520_s9 = scalar_lea.vmem %s150_s22, 1024  ;;  %p3525_p2 = scmp.lt.s32.totalorder %s150_s22, %s150_s22 }
  0x64   :  { %p3521_p1 = scmp.ne.s32.totalorder %s150_s22, %s3520_s9  ;;  %p3526_p3 = scmp.lt.s32.totalorder %s3520_s9, %s3520_s9 }
  0x66   :  { %p3527_p4 = por %p3526_p3, %p3525_p2 }
  0x68   :  { %p3528_p5 = pnand %p3527_p4, %p3521_p1 }
  0x6a   :  { %3531 = shalt.err (!%p3528_p5)
}
  0x6b   :  { %155 = dma.hbm_to_vmem [thread:$0]  %s4423_s11, 1024, %s150_s22, [#allocation21], %s3729_s3, %s3729_s3, %s3730_s28  }
  0x6c   :  { %s3532_s18 = scalar_lea.hbm %s4412_s0, 256 }
  0x6d   :  { %p3533_p6 = scmp.ne.s32.totalorder %s4412_s0, %s3532_s18  ;;  %p3536_p7 = scmp.lt.u32.totalorder %s3532_s18, %s4412_s0 }
  0x6f   :  { %p3538_p8 = pnand %p3536_p7, %p3533_p6 }
  0x71   :  { %3541 = shalt.err (!%p3538_p8)
}
  0x72   :  { %s3542_s23 = scalar_lea.vmem %s32_s24, 256  ;;  %p3547_p10 = scmp.lt.s32.totalorder %s32_s24, %s32_s24 }
  0x73   :  { %p3543_p9 = scmp.ne.s32.totalorder %s32_s24, %s3542_s23  ;;  %p3548_p11 = scmp.lt.s32.totalorder %s3542_s23, %s3542_s23 }
  0x75   :  { %p3549_p12 = por %p3548_p11, %p3547_p10 }
  0x77   :  { %p3550_p13 = pnand %p3549_p12, %p3543_p9 }
  0x79   :  { %3553 = shalt.err (!%p3550_p13)
}
  0x7a   :  { %s3735_s11 = smov 128   ;;  %s3736_s28 = smov 8  }
  0x7b   :  { %37 = dma.hbm_to_vmem [thread:$0]  %s4412_s0, 256, %s32_s24, [#allocation3], %s3735_s11, %s3735_s11, %s3736_s28  }
  0x7c   :  { %s3737_s19 = smov [#allocation7]   ;;  %s3738_s27 = smov [#allocation10]  }
  0x7d   :  { %s54_s25 = sshll.u32 %s3737_s19, 4  ;;  %s76_s29 = sshll.u32 %s3738_s27, 4  ;;  %s55_s25 = int_to_ptr.vmem [resolvable:$true] %s54_s25  ;;  %s77_s29 = int_to_ptr.vmem [resolvable:$true] %s76_s29 }
  0x7e   :  { %s3554_s9 = scalar_lea.hbm %s4414_s2, 16 }
  0x7f   :  { %p3555_p0 = scmp.ne.s32.totalorder %s4414_s2, %s3554_s9  ;;  %p3558_p1 = scmp.lt.u32.totalorder %s3554_s9, %s4414_s2 }
  0x81   :  { %p3560_p2 = pnand %p3558_p1, %p3555_p0 }
  0x83   :  { %3563 = shalt.err (!%p3560_p2)
}
  0x84   :  { %s3564_s0 = scalar_lea.vmem %s55_s25, 16  ;;  %s3568_s24 = scalar_lea.vmem %s55_s25, 32 }
  0x85   :  { %p3565_p3 = scmp.ne.s32.totalorder %s55_s25, %s3564_s0  ;;  %p3569_p4 = scmp.lt.s32.totalorder %s55_s25, %s55_s25 }
  0x86   :  { %p3570_p5 = scmp.lt.s32.totalorder %s3568_s24, %s3564_s0 }
  0x88   :  { %p3571_p6 = por %p3570_p5, %p3569_p4 }
  0x8a   :  { %p3572_p7 = pnand %p3571_p6, %p3565_p3 }
  0x8c   :  { %3575 = shalt.err (!%p3572_p7)
}
  0x8d   :  { %57 = dma.hbm_to_vmem [thread:$0]  %s4414_s2, 16, %s55_s25, [#allocation6]  }
  0x8e   :  { %s3576_s21 = scalar_lea.hbm %s4416_s4, 48 }
  0x8f   :  { %p3577_p8 = scmp.ne.s32.totalorder %s4416_s4, %s3576_s21  ;;  %p3580_p9 = scmp.lt.u32.totalorder %s3576_s21, %s4416_s4 }
  0x91   :  { %p3582_p10 = pnand %p3580_p9, %p3577_p8 }
  0x93   :  { %3585 = shalt.err (!%p3582_p10)
}
  0x94   :  { %s3586_s27 = scalar_lea.vmem %s77_s29, 48  ;;  %s3590_s30 = scalar_lea.vmem %s77_s29, 64 }
  0x95   :  { %p3587_p11 = scmp.ne.s32.totalorder %s77_s29, %s3586_s27  ;;  %p3591_p12 = scmp.lt.s32.totalorder %s77_s29, %s77_s29 }
  0x96   :  { %p3592_p13 = scmp.lt.s32.totalorder %s3590_s30, %s3586_s27 }
  0x98   :  { %p3593_p0 = por %p3592_p13, %p3591_p12 }
  0x9a   :  { %p3594_p1 = pnand %p3593_p0, %p3587_p11 }
  0x9c   :  { %3597 = shalt.err (!%p3594_p1)
}
  0x9d   :  { %79 = dma.hbm_to_vmem [thread:$0]  %s4416_s4, 48, %s77_s29, [#allocation9]  }
  0x9e   :  { %s3739_s14 = smov [#allocation13]   ;;  %s3740_s16 = smov [#allocation16]  }
  0x9f   :  { %s98_s9 = sshll.u32 %s3739_s14, 4  ;;  %s118_s15 = sshll.u32 %s3740_s16, 4  ;;  %s99_s9 = int_to_ptr.vmem [resolvable:$true] %s98_s9  ;;  %s119_s15 = int_to_ptr.vmem [resolvable:$true] %s118_s15 }
  0xa0   :  { %s3598_s0 = scalar_lea.hbm %s4418_s6, 16 }
  0xa1   :  { %p3599_p2 = scmp.ne.s32.totalorder %s4418_s6, %s3598_s0  ;;  %p3602_p3 = scmp.lt.u32.totalorder %s3598_s0, %s4418_s6 }
  0xa3   :  { %p3604_p4 = pnand %p3602_p3, %p3599_p2 }
  0xa5   :  { %3607 = shalt.err (!%p3604_p4)
}
  0xa6   :  { %s3608_s4 = scalar_lea.vmem %s99_s9, 16  ;;  %s3612_s29 = scalar_lea.vmem %s99_s9, 32 }
  0xa7   :  { %p3609_p5 = scmp.ne.s32.totalorder %s99_s9, %s3608_s4  ;;  %p3613_p6 = scmp.lt.s32.totalorder %s99_s9, %s99_s9 }
  0xa8   :  { %p3614_p7 = scmp.lt.s32.totalorder %s3612_s29, %s3608_s4 }
  0xaa   :  { %p3615_p8 = por %p3614_p7, %p3613_p6 }
  0xac   :  { %p3616_p9 = pnand %p3615_p8, %p3609_p5 }
  0xae   :  { %3619 = shalt.err (!%p3616_p9)
}
  0xaf   :  { %101 = dma.hbm_to_vmem [thread:$0]  %s4418_s6, 16, %s99_s9, [#allocation12]  }
  0xb0   :  { %s3620_s5 = scalar_lea.hbm %s4420_s8, 16 }
  0xb1   :  { %p3621_p10 = scmp.ne.s32.totalorder %s4420_s8, %s3620_s5  ;;  %p3624_p11 = scmp.lt.u32.totalorder %s3620_s5, %s4420_s8 }
  0xb3   :  { %p3626_p12 = pnand %p3624_p11, %p3621_p10 }
  0xb5   :  { %3629 = shalt.err (!%p3626_p12)
}
  0xb6   :  { %s3630_s25 = scalar_lea.vmem %s119_s15, 16  ;;  %s3634_s14 = scalar_lea.vmem %s119_s15, 32 }
  0xb7   :  { %p3631_p13 = scmp.ne.s32.totalorder %s119_s15, %s3630_s25  ;;  %p3635_p0 = scmp.lt.s32.totalorder %s119_s15, %s119_s15 }
  0xb8   :  { %p3636_p1 = scmp.lt.s32.totalorder %s3634_s14, %s3630_s25 }
  0xba   :  { %p3637_p2 = por %p3636_p1, %p3635_p0 }
  0xbc   :  { %p3638_p3 = pnand %p3637_p2, %p3631_p13 }
  0xbe   :  { %3641 = shalt.err (!%p3638_p3)
}
  0xbf   :  { %121 = dma.hbm_to_vmem [thread:$0]  %s4420_s8, 16, %s119_s15, [#allocation15]  }
  0xc0   :  { %s3741_s16 = smov [#allocation19]   ;;  %s3742_s17 = smov [#allocation22]  }
  0xc1   :  { %s140_s26 = sshll.u32 %s3741_s16, 4  ;;  %s162_s0 = sshll.u32 %s3742_s17, 4  ;;  %s141_s26 = int_to_ptr.vmem [resolvable:$true] %s140_s26  ;;  %s163_s0 = int_to_ptr.vmem [resolvable:$true] %s162_s0 }
  0xc2   :  { %s3642_s20 = scalar_lea.hbm %s4422_s10, 16 }
  0xc3   :  { %p3643_p4 = scmp.ne.s32.totalorder %s4422_s10, %s3642_s20  ;;  %p3646_p5 = scmp.lt.u32.totalorder %s3642_s20, %s4422_s10 }
  0xc5   :  { %p3648_p6 = pnand %p3646_p5, %p3643_p4 }
  0xc7   :  { %3651 = shalt.err (!%p3648_p6)
}
  0xc8   :  { %s3652_s8 = scalar_lea.vmem %s141_s26, 16  ;;  %s3656_s15 = scalar_lea.vmem %s141_s26, 32 }
  0xc9   :  { %p3653_p7 = scmp.ne.s32.totalorder %s141_s26, %s3652_s8  ;;  %p3657_p8 = scmp.lt.s32.totalorder %s141_s26, %s141_s26 }
  0xca   :  { %p3658_p9 = scmp.lt.s32.totalorder %s3656_s15, %s3652_s8 }
  0xcc   :  { %p3659_p10 = por %p3658_p9, %p3657_p8 }
  0xce   :  { %p3660_p11 = pnand %p3659_p10, %p3653_p7 }
  0xd0   :  { %3663 = shalt.err (!%p3660_p11)
}
  0xd1   :  { %143 = dma.hbm_to_vmem [thread:$0]  %s4422_s10, 16, %s141_s26, [#allocation18]  }
  0xd2   :  { %s3664_s19 = scalar_lea.hbm %s4424_s12, 16 }
  0xd3   :  { %p3665_p12 = scmp.ne.s32.totalorder %s4424_s12, %s3664_s19  ;;  %p3668_p13 = scmp.lt.u32.totalorder %s3664_s19, %s4424_s12 }
  0xd5   :  { %p3670_p0 = pnand %p3668_p13, %p3665_p12 }
  0xd7   :  { %3673 = shalt.err (!%p3670_p0)
}
  0xd8   :  { %s3674_s14 = scalar_lea.vmem %s163_s0, 16  ;;  %s3678_s6 = scalar_lea.vmem %s163_s0, 32 }
  0xd9   :  { %p3675_p1 = scmp.ne.s32.totalorder %s163_s0, %s3674_s14  ;;  %p3679_p2 = scmp.lt.s32.totalorder %s163_s0, %s163_s0 }
  0xda   :  { %p3680_p3 = scmp.lt.s32.totalorder %s3678_s6, %s3674_s14 }
  0xdc   :  { %p3681_p4 = por %p3680_p3, %p3679_p2 }
  0xde   :  { %p3682_p5 = pnand %p3681_p4, %p3675_p1 }
  0xe0   :  { %3685 = shalt.err (!%p3682_p5)
}
  0xe1   :  { %165 = dma.hbm_to_vmem [thread:$0]  %s4424_s12, 16, %s163_s0, [#allocation21]  }
  0xe2   :  { %3708 = dma.done.wait [#allocation3], 256  }
  0xe3   :  { %3709 = vsyncadd [#allocation3], 4294967040 }
  0xe4   :  { %3710 = dma.done.wait [#allocation6], 32  }
  0xe5   :  { %3711 = vsyncadd [#allocation6], 4294967264 }
  0xe6   :  { %3712 = dma.done.wait [#allocation9], 3120  }
  0xe7   :  { %3713 = vsyncadd [#allocation9], 4294964176 }
  0xe8   :  { %3714 = dma.done.wait [#allocation12], 1040  }
  0xe9   :  { %3715 = vsyncadd [#allocation12], 4294966256 }
  0xea   :  { %3716 = dma.done.wait [#allocation15], 32  }
  0xeb   :  { %3717 = vsyncadd [#allocation15], 4294967264 }
  0xec   :  { %3718 = dma.done.wait [#allocation18], 1040  }
  0xed   :  { %3719 = vsyncadd [#allocation18], 4294966256 }
  0xee   :  { %3720 = dma.done.wait [#allocation21], 1040  }
  0xef   :  { %3721 = vsyncadd [#allocation21], 4294966256  ;;  %v3743_v0 = vmov 0.0   ;;  %v3997_v1 = vld [vmem:[#allocation2] sm:$0xff]  ;;  %v3999_v2 = vld [vmem:[#allocation2 + $0x8] sm:$0xff]  ;;  %v3744_v26 = vmov 0   ;;  %v287_v57 = vlaneseq }
  0xf0   :  { %3095 = vmatprep.subr.bf16.mxu1 %v3743_v0  ;;  %210 = vadd.xlane.f32.xlu0 %v3997_v1  ;;  %v216_v3 = vmul.f32 %v3997_v1, %v3997_v1  ;;  %v3298_v4 = vld [vmem:[#allocation8 + $0x4] ss:$12 sps:$4 sm:$0xff]   ;;  %v217_v5 = vmul.f32 %v3999_v2, %v3999_v2  ;;  %v3300_v6 = vld [vmem:[#allocation8] ss:$12 sps:$4 sm:$0xff]   ;;  %v3301_v7 = vld [vmem:[#allocation8 + $0x8] ss:$12 sps:$4 sm:$0xff]  }
  0xf1   :  { %430 = vmatprep.subr.bf16.mxu0 %v3298_v4  ;;  %3096 = vmatpush3.bf16.msra.mxu1 %v3301_v7  ;;  %v3302_v8 = vld [vmem:[#allocation8 + $0x1c] ss:$12 sps:$4 sm:$0xff]   ;;  %v3304_v9 = vld [vmem:[#allocation8 + $0x18] ss:$12 sps:$4 sm:$0xff]   ;;  %v3305_v10 = vld [vmem:[#allocation8 + $0x20] ss:$12 sps:$4 sm:$0xff]  }
  0xf2   :  { %218 = vadd.xlane.f32.xlu1 %v216_v3  ;;  %431 = vmatpush1.bf16.msra.mxu0 %v3300_v6  ;;  %v3306_v11 = vld [vmem:[#allocation8 + $0x34] ss:$12 sps:$4 sm:$0xff]   ;;  %v3308_v12 = vld [vmem:[#allocation8 + $0x30] ss:$12 sps:$4 sm:$0xff]   ;;  %v3309_v13 = vld [vmem:[#allocation8 + $0x38] ss:$12 sps:$4 sm:$0xff]  }
  0xf3   :  { %3097 = vmatprep.subr.bf16.mxu1 %v3743_v0  ;;  %432 = vmatprep.subr.bf16.mxu0 %v3302_v8  ;;  %v3310_v14 = vld [vmem:[#allocation8 + $0x4c] ss:$12 sps:$4 sm:$0xff]   ;;  %v3312_v15 = vld [vmem:[#allocation8 + $0x48] ss:$12 sps:$4 sm:$0xff]   ;;  %v3313_v16 = vld [vmem:[#allocation8 + $0x50] ss:$12 sps:$4 sm:$0xff]  }
  0xf4   :  { %212 = vadd.xlane.f32.xlu0 %v3999_v2  ;;  %v3314_v17 = vld [vmem:[#allocation8 + $0x64] ss:$12 sps:$4 sm:$0xff]   ;;  %v3316_v18 = vld [vmem:[#allocation8 + $0x60] ss:$12 sps:$4 sm:$0xff]   ;;  %v3317_v19 = vld [vmem:[#allocation8 + $0x68] ss:$12 sps:$4 sm:$0xff]   ;;  %462 = vmatprep.mubr.bf16.mxu0 %v3744_v26 }
  0xf5   :  { %3098 = vmatpush3.bf16.msra.mxu1 %v3305_v10  ;;  %v3318_v20 = vld [vmem:[#allocation8 + $0x7c] ss:$12 sps:$4 sm:$0xff]   ;;  %v3320_v21 = vld [vmem:[#allocation8 + $0x78] ss:$12 sps:$4 sm:$0xff]   ;;  %v3321_v22 = vld [vmem:[#allocation8 + $0x80] ss:$12 sps:$4 sm:$0xff]  }
  0xf6   :  { %220 = vadd.xlane.f32.xlu1 %v217_v5  ;;  %433 = vmatpush1.bf16.msra.mxu0 %v3304_v9  ;;  %v3322_v23 = vld [vmem:[#allocation8 + $0x94] ss:$12 sps:$4 sm:$0xff]   ;;  %v3324_v24 = vld [vmem:[#allocation8 + $0x90] ss:$12 sps:$4 sm:$0xff]   ;;  %v3325_v25 = vld [vmem:[#allocation8 + $0x98] ss:$12 sps:$4 sm:$0xff]  }
  0xf7   :  { %3099 = vmatprep.subr.bf16.mxu1 %v3743_v0  ;;  %434 = vmatprep.subr.bf16.mxu0 %v3306_v11  ;;  %vm3745_vm0 = vmmov 0   ;;  %v3326_v27 = vld [vmem:[#allocation8 + $0xac] ss:$12 sps:$4 sm:$0xff]   ;;  %v3328_v28 = vld [vmem:[#allocation8 + $0xa8] ss:$12 sps:$4 sm:$0xff]   ;;  %v288_v58 = vshrl.u32 %v287_v57, 7 }
  0xf8   :  { %3111 = vmatprep.mubr.msk.bf16.mxu1 %vm3745_vm0, %v3743_v0  ;;  %v3329_v29 = vld [vmem:[#allocation8 + $0xb0] ss:$12 sps:$4 sm:$0xff]   ;;  %v285_v61 = vld [vmem:[#allocation10] sm:$0x7]  ;;  %s3746_s12 = smov 96   ;;  %s3747_s16 = smov 32  }
  0xf9   :  { %3100 = vmatpush3.bf16.msra.mxu1 %v3309_v13  ;;  %v2944_v47 = vld [vmem:[#allocation5] ss:$0 sm:$0xff]  ;;  %v2945_v52 = vld [vmem:[#allocation7] ss:$0 sm:$0xff]  ;;  %v289_v59 = vsub.s32 0, %v288_v58  ;;  %v297_v60 = vsub.s32 2, %v288_v58 }
  0xfa   :  { %435 = vmatpush1.bf16.msra.mxu0 %v3308_v12  ;;  %3101 = vmatprep.subr.bf16.mxu1 %v3743_v0  ;;  %v293_v62 = vsub.s32 1, %v288_v58  ;;  %vm1360_vm1 = vcmask 261120   ;;  %vm1729_vm2 = vcmask 64512   ;;  %vm1829_vm3 = vcmask 1043456  }
  0xfb   :  { %436 = vmatprep.subr.bf16.mxu0 %v3310_v14  ;;  %v290_v63 = vrot.slane %v285_v61, %v289_v59  ;;  %vm2516_vm4 = vcmask 523264   ;;  %vm2519_vm5 = vcmask 785408  }
  0xfc   :  { %v294_v4 = vrot.slane %v285_v61, %v293_v62 }
  0xfd   :  { %3102 = vmatpush3.bf16.msra.mxu1 %v3313_v16 }
  0xfe   :  { %437 = vmatpush1.bf16.msra.mxu0 %v3312_v15  ;;  %3103 = vmatprep.subr.bf16.mxu1 %v3743_v0 }
  0xff   :  { %438 = vmatprep.subr.bf16.mxu0 %v3314_v17 }
 0x101   :  { %3104 = vmatpush3.bf16.msra.mxu1 %v3317_v19 }
 0x102   :  { %439 = vmatpush1.bf16.msra.mxu0 %v3316_v18  ;;  %3105 = vmatprep.subr.bf16.mxu1 %v3743_v0 }
 0x103   :  { %440 = vmatprep.subr.bf16.mxu0 %v3318_v20  ;;  %v3748_v20 = vmov 1983009808  }
 0x105   :  { %3106 = vmatpush3.bf16.msra.mxu1 %v3321_v22 }
 0x106   :  { %441 = vmatpush1.bf16.msra.mxu0 %v3320_v21  ;;  %3107 = vmatprep.subr.bf16.mxu1 %v3743_v0  ;;  %v548_v21 = vunpack.c.l.s4 %v3748_v20 }
 0x107   :  { %442 = vmatprep.subr.bf16.mxu0 %v3322_v23  ;;  %v3749_v23 = vmov 1934713408  }
 0x108   :  { %v549_v22 = vunpack.c.0.s8 %v548_v21 }
 0x109   :  { %3108 = vmatpush3.bf16.msra.mxu1 %v3325_v25 }
 0x10a   :  { %443 = vmatpush1.bf16.msra.mxu0 %v3324_v24  ;;  %3109 = vmatprep.subr.bf16.mxu1 %v3743_v0  ;;  %v579_v24 = vunpack.c.l.s4 %v3749_v23 }
 0x10b   :  { %444 = vmatprep.subr.bf16.mxu0 %v3326_v27  ;;  %v4035_v27 = vpack.i.b16 %v3744_v26, %v3744_v26 }
 0x10d   :  { %3110 = vmatpush3.bf16.msra.mxu1 %v3329_v29 }
 0x10e   :  { %445 = vmatpush1.bf16.msra.mxu0 %v3328_v28  ;;  %3115 = vmatprep.subr.bf16.mxu1 %v3743_v0 }
 0x10f   :  { %3139 = vmatprep.subr.bf16.mxu0 %v3743_v0 }
 0x17d   :  { %v211_v30 = vpop.xlane.xlu0 %210 }
 0x17e   :  { %v214_v31 = vmul.f32 0.03125, %v211_v30 }
 0x17f   :  { %v219_v32 = vpop.xlane.xlu1 %218 }
 0x180   :  { %v224_v33 = vmul.f32 %v214_v31, %v214_v31  ;;  %v222_v34 = vmul.f32 0.03125, %v219_v32  ;;  %v228_v44 = vsub.f32 %v3997_v1, %v214_v31  ;;  %v298_v1 = vrot.slane %v285_v61, %v297_v60 }
 0x181   :  { %v213_v35 = vpop.xlane.xlu0 %212  ;;  %v4037_v32 = vsub.s32 %v549_v22, %v288_v58 }
 0x182   :  { %v226_v36 = vsub.f32 %v222_v34, %v224_v33  ;;  %v215_v37 = vmul.f32 0.03125, %v213_v35  ;;  %v580_v33 = vunpack.c.0.s8 %v579_v24 }
 0x183   :  { %v221_v38 = vpop.xlane.xlu1 %220 }
 0x184   :  { %v230_v39 = vadd.f32 1e-05, %v226_v36  ;;  %v225_v40 = vmul.f32 %v215_v37, %v215_v37  ;;  %v223_v41 = vmul.f32 0.03125, %v221_v38  ;;  %v229_v48 = vsub.f32 %v3999_v2, %v215_v37 }
 0x186   :  { %3354 = vrsqrt.f32 %v230_v39  ;;  %v227_v42 = vsub.f32 %v223_v41, %v225_v40  ;;  %v4041_v41 = vsub.s32 %v580_v33, %v288_v58 }
 0x188   :  { %v231_v43 = vadd.f32 1e-05, %v227_v42 }
 0x18a   :  { %3356 = vrsqrt.f32 %v231_v43 }
 0x190   :  { %v3355_v45 = vpop.eup %3354 }
 0x191   :  { %v234_v46 = vmul.f32 %v3355_v45, %v228_v44 }
 0x193   :  { %v242_v51 = vmul.f32 %v2944_v47, %v234_v46 }
 0x194   :  { %v3357_v49 = vpop.eup %3356 }
 0x195   :  { %v235_v50 = vmul.f32 %v3357_v49, %v229_v48  ;;  %v250_v54 = vadd.f32 %v2945_v52, %v242_v51 }
 0x197   :  { %v243_v53 = vmul.f32 %v2944_v47, %v235_v50 }
 0x199   :  { %v251_v55 = vadd.f32 %v2945_v52, %v243_v53 }
 0x19b   :  { %v252_v56 = vpack.c.bf16 %v251_v55, %v250_v54 }
 0x19d   :  { %463 = vmatmul.mubr.bf16.vlgmr.msra.gmra.mrb[0].mxu0 %v252_v56  ;;  %3112 = vmatmul.mubr.bf16.vlgmr.msra.gmra.mrb[0].mxu1 %v252_v56 }
 0x19e   :  { %3117 = vmatprep.mubr.msk.bf16.mxu1 %vm3745_vm0, %v3743_v0  ;;  %3141 = vmatprep.mubr.msk.bf16.mxu0 %vm3745_vm0, %v3743_v0 }
 0x270   :  { %v464_v2 = vpop.f32.mrb[0].mxu0  ;;  %v507_v3 = vpop.f32.mrb[0].mxu1 }
 0x271   :  { %v466_v5 = vpop.f32.mrb[1].mxu0  ;;  %v3113_v6 = vpop.f32.mrb[1].mxu1  ;;  %v465_v9 = vadd.f32 %v464_v2, %v290_v63  ;;  %v508_v10 = vadd.f32 %v507_v3, %v298_v1 }
 0x272   :  { %v468_v7 = vpop.f32.mrb[2].mxu0  ;;  %v510_v8 = vpop.f32.mrb[2].mxu1  ;;  %v467_v15 = vadd.f32 %v466_v5, %v294_v4 }
 0x273   :  { %v469_v11 = vadd.f32 %v468_v7, %v290_v63  ;;  %v511_v12 = vadd.f32 %v510_v8, %v298_v1  ;;  %v470_v13 = vpop.f32.mrb[3].mxu0  ;;  %v3114_v14 = vpop.f32.mrb[3].mxu1 }
 0x274   :  { %v471_v16 = vadd.f32 %v470_v13, %v294_v4 }
 0x275   :  { %v514_v17 = vpack.c.bf16 %v469_v11, %v465_v9  ;;  %v4025_v18 = vpack.c.bf16 %v511_v12, %v508_v10 }
 0x276   :  { %v515_v19 = vpack.c.bf16 %v471_v16, %v467_v15 }
 0x277   :  { %v528_v49 = vshrl.u32 %v514_v17, 16 }
 0x278   :  { %805 = vrot.lane.b32.xlu1 %v515_v19, %s3729_s3  ;;  %803 = vrot.lane.b32.xlu0 %v515_v19, %s3746_s12  ;;  %v813_v30 = vshrl.u32 %v515_v19, 16 }
 0x27c   :  { %807 = vrot.lane.b32.xlu1 %v515_v19, %s3747_s16  ;;  %520 = vrot.lane.b32.xlu0 %v514_v17, %s3729_s3 }
 0x280   :  { %518 = vrot.lane.b32.xlu1 %v514_v17, %s3746_s12 }
 0x284   :  { %522 = vrot.lane.b32.xlu1 %v514_v17, %s3747_s16 }
 0x2ea   :  { %v806_v25 = vpop.permute.xlu1 %805  ;;  %v804_v28 = vpop.permute.xlu0 %803 }
 0x2eb   :  { %v811_v29 = vpack.i.b16 %v804_v28, %v515_v19  ;;  %v814_v31 = vshrl.u32 %v804_v28, 16  ;;  %v821_v39 = vshrl.u32 %v806_v25, 16 }
 0x2ed   :  { %v815_v34 = vpack.i.b16 %v814_v31, %v813_v30  ;;  %v825_v35 = vcombine.high %v811_v29, %v4035_v27  ;;  %v832_v42 = vrot.slane %v811_v29, %v4037_v32 }
 0x2ee   :  { %v808_v36 = vpop.permute.xlu1 %807  ;;  %v521_v15 = vpop.permute.xlu0 %520 }
 0x2ef   :  { %v891_v37 = vcombine.high %v815_v34, %v4035_v27  ;;  %v819_v38 = vpack.i.b16 %v808_v36, %v806_v25  ;;  %v822_v40 = vshrl.u32 %v808_v36, 16  ;;  %v839_v45 = vrot.slane %v825_v35, %v4037_v32 }
 0x2f0   :  { %v898_v46 = vrot.slane %v815_v34, %v4037_v32  ;;  %v536_v29 = vshrl.u32 %v521_v15, 16 }
 0x2f1   :  { %v840_v43 = vcombine.high %v819_v38, %v4035_v27  ;;  %v847_v44 = vrot.slane %v819_v38, %v4037_v32  ;;  %v823_v47 = vpack.i.b16 %v822_v40, %v821_v39  ;;  %v905_v50 = vrot.slane %v891_v37, %v4037_v32 }
 0x2f2   :  { %v519_v48 = vpop.permute.xlu1 %518 }
 0x2f3   :  { %v854_v51 = vrot.slane %v840_v43, %v4037_v32  ;;  %v855_v52 = vcombine.low %v832_v42, %v847_v44  ;;  %v856_v53 = vcombine.high %v832_v42, %v847_v44  ;;  %v906_v54 = vcombine.high %v823_v47, %v4035_v27 }
 0x2f4   :  { %v913_v55 = vrot.slane %v823_v47, %v4037_v32  ;;  %v526_v56 = vpack.i.b16 %v519_v48, %v514_v17  ;;  %v529_v57 = vshrl.u32 %v519_v48, 16 }
 0x2f5   :  { %v863_v58 = vrot.slane %v855_v52, %v4041_v41  ;;  %v870_v59 = vrot.slane %v856_v53, %v4041_v41  ;;  %v871_v60 = vcombine.low %v839_v45, %v854_v51  ;;  %v872_v61 = vcombine.high %v839_v45, %v854_v51 }
 0x2f6   :  { %v920_v62 = vrot.slane %v906_v54, %v4037_v32  ;;  %v921_v63 = vcombine.low %v898_v46, %v913_v55  ;;  %v922_v1 = vcombine.high %v898_v46, %v913_v55  ;;  %v530_v2 = vpack.i.b16 %v529_v57, %v528_v49  ;;  %v523_v21 = vpop.permute.xlu1 %522 }
 0x2f7   :  { %v879_v3 = vrot.slane %v871_v60, %v4041_v41  ;;  %v886_v4 = vrot.slane %v872_v61, %v4041_v41  ;;  %v957_v5 = vcombine.low %v863_v58, %v870_v59  ;;  %v2974_v6 = vcombine.high %v863_v58, %v870_v59 }
 0x2f8   :  { %v929_v7 = vrot.slane %v921_v63, %v4041_v41  ;;  %v936_v8 = vrot.slane %v922_v1, %v4041_v41  ;;  %v937_v9 = vcombine.low %v905_v50, %v920_v62  ;;  %v938_v10 = vcombine.high %v905_v50, %v920_v62 }
 0x2f9   :  { %v964_v11 = vrot.slane %v957_v5, %v4037_v32  ;;  %v972_v12 = vrot.slane %v2974_v6, %v4037_v32  ;;  %v1007_v13 = vcombine.low %v879_v3, %v886_v4  ;;  %v2976_v14 = vcombine.high %v879_v3, %v886_v4 }
 0x2fa   :  { %v945_v16 = vrot.slane %v937_v9, %v4041_v41  ;;  %v952_v17 = vrot.slane %v938_v10, %v4041_v41  ;;  %v982_v19 = vcombine.low %v929_v7, %v936_v8  ;;  %v2975_v20 = vcombine.high %v929_v7, %v936_v8 }
 0x2fb   :  { %v4064_v22 = vrot.slane %v1007_v13, %v4037_v32  ;;  %v4067_v23 = vrot.slane %v2976_v14, %v4037_v32  ;;  %v546_v24 = vcombine.high %v526_v56, %v4035_v27  ;;  %v553_v30 = vrot.slane %v526_v56, %v4037_v32 }
 0x2fc   :  { %v989_v25 = vrot.slane %v982_v19, %v4037_v32  ;;  %v997_v28 = vrot.slane %v2975_v20, %v4037_v32  ;;  %v1032_v31 = vcombine.low %v945_v16, %v952_v17  ;;  %v2977_v33 = vcombine.high %v945_v16, %v952_v17 }
 0x2fd   :  { %v612_v34 = vcombine.high %v530_v2, %v4035_v27  ;;  %v534_v35 = vpack.i.b16 %v523_v21, %v521_v15  ;;  %v560_v36 = vrot.slane %v546_v24, %v4037_v32  ;;  %v537_v37 = vshrl.u32 %v523_v21, 16 }
 0x2fe   :  { %v973_v38 = vcombine.low %v964_v11, %v972_v12  ;;  %v998_v39 = vcombine.low %v989_v25, %v997_v28  ;;  %v619_v40 = vrot.slane %v530_v2, %v4037_v32  ;;  %v1023_v44 = vcombine.low %v4064_v22, %v4067_v23 }
 0x2ff   :  { %v561_v42 = vcombine.high %v534_v35, %v4035_v27  ;;  %v568_v43 = vrot.slane %v534_v35, %v4037_v32  ;;  %v626_v45 = vrot.slane %v612_v34, %v4037_v32  ;;  %v538_v46 = vpack.i.b16 %v537_v37, %v536_v29 }
 0x300   :  { %v4082_v47 = vrot.slane %v973_v38, %v4041_v41  ;;  %v4085_v48 = vrot.slane %v998_v39, %v4041_v41  ;;  %v1039_v52 = vrot.slane %v1032_v31, %v4037_v32  ;;  %v1047_v56 = vrot.slane %v2977_v33, %v4037_v32 }
 0x301   :  { %v575_v49 = vrot.slane %v561_v42, %v4037_v32  ;;  %v576_v50 = vcombine.low %v553_v30, %v568_v43  ;;  %v577_v51 = vcombine.high %v553_v30, %v568_v43  ;;  %v627_v53 = vcombine.high %v538_v46, %v4035_v27 }
 0x302   :  { %v634_v54 = vrot.slane %v538_v46, %v4037_v32  ;;  %v1059_v55 = vpack.i.b16 %v4085_v48, %v4082_v47  ;;  %v1048_v22 = vcombine.low %v1039_v52, %v1047_v56  ;;  %v4112_v29 = vrot.slane %v1023_v44, %v4041_v41 }
 0x303   :  { %v584_v57 = vrot.slane %v576_v50, %v4041_v41  ;;  %v591_v58 = vrot.slane %v577_v51, %v4041_v41  ;;  %v592_v59 = vcombine.low %v560_v36, %v575_v49  ;;  %v593_v60 = vcombine.high %v560_v36, %v575_v49 }
 0x304   :  { %v641_v61 = vrot.slane %v627_v53, %v4037_v32  ;;  %v642_v62 = vcombine.low %v619_v40, %v634_v54  ;;  %v643_v63 = vcombine.high %v619_v40, %v634_v54  ;;  %v1365_v1 = vsel %vm1360_vm1, %v1059_v55, 0 }
 0x305   :  { %v600_v2 = vrot.slane %v592_v59, %v4041_v41  ;;  %v607_v3 = vrot.slane %v593_v60, %v4041_v41  ;;  %v678_v4 = vcombine.low %v584_v57, %v591_v58  ;;  %v2970_v5 = vcombine.high %v584_v57, %v591_v58  ;;  %3116 = vmatpush3.bf16.xpose.msra.mxu1 %v1365_v1 }
 0x306   :  { %v650_v6 = vrot.slane %v642_v62, %v4041_v41  ;;  %v657_v7 = vrot.slane %v643_v63, %v4041_v41  ;;  %v658_v8 = vcombine.low %v626_v45, %v641_v61  ;;  %v659_v9 = vcombine.high %v626_v45, %v641_v61  ;;  %3121 = vmatprep.subr.bf16.mxu1 %v3743_v0 }
 0x307   :  { %v685_v10 = vrot.slane %v678_v4, %v4037_v32  ;;  %v693_v11 = vrot.slane %v2970_v5, %v4037_v32  ;;  %v728_v12 = vcombine.low %v600_v2, %v607_v3  ;;  %v2972_v13 = vcombine.high %v600_v2, %v607_v3 }
 0x308   :  { %v666_v14 = vrot.slane %v658_v8, %v4041_v41  ;;  %v673_v15 = vrot.slane %v659_v9, %v4041_v41  ;;  %v703_v16 = vcombine.low %v650_v6, %v657_v7  ;;  %v2971_v17 = vcombine.high %v650_v6, %v657_v7 }
 0x309   :  { %v694_v19 = vcombine.low %v685_v10, %v693_v11  ;;  %v735_v20 = vrot.slane %v728_v12, %v4037_v32  ;;  %v743_v21 = vrot.slane %v2972_v13, %v4037_v32  ;;  %v4115_v30 = vrot.slane %v1048_v22, %v4041_v41 }
 0x30a   :  { %v710_v23 = vrot.slane %v703_v16, %v4037_v32  ;;  %v718_v24 = vrot.slane %v2971_v17, %v4037_v32  ;;  %v753_v25 = vcombine.low %v666_v14, %v673_v15  ;;  %v2973_v28 = vcombine.high %v666_v14, %v673_v15 }
 0x30b   :  { %v1061_v31 = vshrl.u32 %v4085_v48, 16  ;;  %v1060_v36 = vshrl.u32 %v4082_v47, 16  ;;  %v744_v37 = vcombine.low %v735_v20, %v743_v21  ;;  %v1071_v38 = vpack.i.b16 %v4115_v30, %v4112_v29 }
 0x30c   :  { %v719_v33 = vcombine.low %v710_v23, %v718_v24  ;;  %v760_v34 = vrot.slane %v753_v25, %v4037_v32  ;;  %v768_v35 = vrot.slane %v2973_v28, %v4037_v32  ;;  %v701_v39 = vrot.slane %v694_v19, %v4041_v41 }
 0x30d   :  { %v1062_v43 = vpack.i.b16 %v1061_v31, %v1060_v36  ;;  %v1549_v44 = vsel %vm1360_vm1, %v1071_v38, 0  ;;  %v1056_v45 = vcombine.high %v4115_v30, %v3744_v26  ;;  %v751_v50 = vrot.slane %v744_v37, %v4041_v41 }
 0x30e   :  { %v769_v40 = vcombine.low %v760_v34, %v768_v35  ;;  %v726_v42 = vrot.slane %v719_v33, %v4041_v41  ;;  %3140 = vmatpush3.bf16.xpose.msra.mxu0 %v1549_v44  ;;  %v1031_v51 = vcombine.high %v4112_v29, %v3744_v26  ;;  %v1006_v53 = vcombine.high %v4085_v48, %v3744_v26 }
 0x30f   :  { %3151 = vmatprep.subr.bf16.mxu0 %v3743_v0  ;;  %v1411_v52 = vsel %vm1360_vm1, %v1062_v43, 0  ;;  %v981_v57 = vcombine.high %v4082_v47, %v3744_v26  ;;  %v781_v58 = vshrl.u32 %v701_v39, 16  ;;  %v752_v63 = vcombine.high %v751_v50, %v3744_v26 }
 0x310   :  { %v780_v46 = vpack.i.b16 %v726_v42, %v701_v39  ;;  %v776_v49 = vrot.slane %v769_v40, %v4041_v41  ;;  %v1077_v55 = vpack.i.b16 %v1056_v45, %v1031_v51  ;;  %v782_v56 = vshrl.u32 %v726_v42, 16 }
 0x311   :  { %v1065_v59 = vpack.i.b16 %v1006_v53, %v981_v57  ;;  %v1067_v47 = vshrl.u32 %v1006_v53, 16  ;;  %v727_v1 = vcombine.high %v726_v42, %v3744_v26  ;;  %v1066_v2 = vshrl.u32 %v981_v57, 16 }
 0x312   :  { %3118 = vmatmul.mubr.msk.bf16.vlgmr.msra.gmra.mrb[4].mxu1 %vm1360_vm1, %v780_v46  ;;  %v792_v54 = vpack.i.b16 %v776_v49, %v751_v50  ;;  %v1641_v60 = vsel %vm1360_vm1, %v1077_v55, 0  ;;  %v783_v48 = vpack.i.b16 %v782_v56, %v781_v58  ;;  %v777_v61 = vcombine.high %v776_v49, %v3744_v26 }
 0x313   :  { %3122 = vmatpush3.bf16.xpose.msra.mxu1 %v1411_v52  ;;  %3123 = vmatprep.mubr.msk.bf16.mxu1 %vm3745_vm0, %v3743_v0  ;;  %v1457_v62 = vsel %vm1360_vm1, %v1065_v59, 0  ;;  %v702_v4 = vcombine.high %v701_v39, %v3744_v26  ;;  %v1068_v5 = vpack.i.b16 %v1067_v47, %v1066_v2  ;;  %v1073_v8 = vshrl.u32 %v4115_v30, 16 }
 0x314   :  { %3127 = vmatprep.subr.bf16.mxu1 %v3743_v0  ;;  %v798_v3 = vpack.i.b16 %v777_v61, %v752_v63  ;;  %v788_v9 = vshrl.u32 %v727_v1, 16  ;;  %v1072_v10 = vshrl.u32 %v4112_v29, 16  ;;  %v1079_v15 = vshrl.u32 %v1056_v45, 16 }
 0x315   :  { %3142 = vmatmul.mubr.msk.bf16.vlgmr.msra.gmra.mrb[4].mxu0 %vm1360_vm1, %v792_v54  ;;  %v786_v6 = vpack.i.b16 %v727_v1, %v702_v4  ;;  %v1503_v7 = vsel %vm1360_vm1, %v1068_v5, 0  ;;  %v787_v11 = vshrl.u32 %v702_v4, 16  ;;  %v794_v16 = vshrl.u32 %v776_v49, 16 }
 0x316   :  { %3152 = vmatpush3.bf16.xpose.msra.mxu0 %v1641_v60  ;;  %3153 = vmatprep.mubr.msk.bf16.mxu0 %vm3745_vm0, %v3743_v0  ;;  %v1074_v12 = vpack.i.b16 %v1073_v8, %v1072_v10  ;;  %v1078_v17 = vshrl.u32 %v1031_v51, 16  ;;  %v793_v19 = vshrl.u32 %v751_v50, 16  ;;  %v800_v23 = vshrl.u32 %v777_v61, 16 }
 0x317   :  { %3163 = vmatprep.subr.bf16.mxu0 %v3743_v0  ;;  %v789_v13 = vpack.i.b16 %v788_v9, %v787_v11  ;;  %v799_v24 = vshrl.u32 %v752_v63, 16 }
 0x318   :  { %v1595_v14 = vsel %vm1360_vm1, %v1074_v12, 0  ;;  %v1080_v20 = vpack.i.b16 %v1079_v15, %v1078_v17  ;;  %v795_v21 = vpack.i.b16 %v794_v16, %v793_v19 }
 0x319   :  { %v801_v25 = vpack.i.b16 %v800_v23, %v799_v24 }
 0x31a   :  { %3124 = vmatmul.mubr.msk.bf16.vlgmr.msra.gmra.mrb[8].mxu1 %vm1360_vm1, %v783_v48  ;;  %v1687_v22 = vsel %vm1360_vm1, %v1080_v20, 0 }
 0x31b   :  { %3128 = vmatpush3.bf16.xpose.msra.mxu1 %v1457_v62  ;;  %3129 = vmatprep.mubr.msk.bf16.mxu1 %vm3745_vm0, %v3743_v0 }
 0x31c   :  { %3133 = vmatprep.subr.bf16.mxu1 %v3743_v0 }
 0x31d   :  { %3154 = vmatmul.mubr.msk.bf16.vlgmr.msra.gmra.mrb[8].mxu0 %vm1360_vm1, %v798_v3 }
 0x31e   :  { %3165 = vmatprep.mubr.msk.bf16.mxu0 %vm3745_vm0, %v3743_v0 }
 0x322   :  { %3130 = vmatmul.mubr.msk.bf16.vlgmr.msra.gmra.mrb[12].mxu1 %vm1360_vm1, %v786_v6 }
 0x323   :  { %3134 = vmatpush3.bf16.xpose.msra.mxu1 %v1503_v7  ;;  %3135 = vmatprep.mubr.msk.bf16.mxu1 %vm3745_vm0, %v3743_v0 }
 0x324   :  { %3145 = vmatprep.subr.bf16.mxu1 %v3743_v0 }
 0x32a   :  { %3136 = vmatmul.mubr.msk.bf16.vlgmr.msra.gmra.mrb[16].mxu1 %vm1360_vm1, %v789_v13 }
 0x32b   :  { %3146 = vmatpush3.bf16.xpose.msra.mxu1 %v1595_v14  ;;  %3147 = vmatprep.mubr.msk.bf16.mxu1 %vm3745_vm0, %v3743_v0 }
 0x32c   :  { %3157 = vmatprep.subr.bf16.mxu1 %v3743_v0 }
 0x332   :  { %3148 = vmatmul.mubr.msk.bf16.vlgmr.msra.gmra.mrb[20].mxu1 %vm1360_vm1, %v795_v21 }
 0x333   :  { %3158 = vmatpush3.bf16.xpose.msra.mxu1 %v1687_v22  ;;  %3159 = vmatprep.mubr.msk.bf16.mxu1 %vm3745_vm0, %v3743_v0 }
 0x334   :  { %3169 = vmatprep.subr.bf16.mxu1 %v3743_v0 }
 0x33a   :  { %3160 = vmatmul.mubr.msk.bf16.vlgmr.msra.gmra.mrb[24].mxu1 %vm1360_vm1, %v801_v25 }
 0x33b   :  { %3171 = vmatprep.mubr.msk.bf16.mxu1 %vm3745_vm0, %v3743_v0 }
 0x3e5   :  { %v1401_v28 = vpop.f32.mrb[4].mxu1 }
 0x3e6   :  { %v3119_v29 = vpop.f32.mrb[5].mxu1  ;;  %v1730_v30 = vsel %vm1729_vm2, %v1401_v28, -inf }
 0x3e7   :  { %1731 = vmax.xlane.f32.xlu0 %v1730_v30  ;;  %v1404_v31 = vpop.f32.mrb[6].mxu1 }
 0x3e8   :  { %v3120_v33 = vpop.f32.mrb[7].mxu1  ;;  %v4180_v34 = vpop.f32.mrb[4].mxu0 }
 0x3e9   :  { %v3143_v35 = vpop.f32.mrb[5].mxu0  ;;  %v1742_v60 = vsel %vm1729_vm2, %v4180_v34, -inf }
 0x3ea   :  { %v1588_v36 = vpop.f32.mrb[6].mxu0 }
 0x3eb   :  { %v3144_v37 = vpop.f32.mrb[7].mxu0 }
 0x3ed   :  { %v1447_v38 = vpop.f32.mrb[8].mxu1 }
 0x3ee   :  { %v3125_v39 = vpop.f32.mrb[9].mxu1  ;;  %v1733_v40 = vsel %vm1729_vm2, %v1447_v38, -inf }
 0x3ef   :  { %1734 = vmax.xlane.f32.xlu1 %v1733_v40  ;;  %v1450_v42 = vpop.f32.mrb[10].mxu1 }
 0x3f0   :  { %v3126_v43 = vpop.f32.mrb[11].mxu1  ;;  %v4183_v44 = vpop.f32.mrb[8].mxu0 }
 0x3f1   :  { %v3155_v45 = vpop.f32.mrb[9].mxu0  ;;  %v1748_v47 = vsel %vm1729_vm2, %v4183_v44, -inf }
 0x3f2   :  { %v1680_v46 = vpop.f32.mrb[10].mxu0 }
 0x3f3   :  { %v3156_v49 = vpop.f32.mrb[11].mxu0 }
 0x3f5   :  { %v1493_v50 = vpop.f32.mrb[12].mxu1 }
 0x3f6   :  { %v3131_v51 = vpop.f32.mrb[13].mxu1  ;;  %v1736_v52 = vsel %vm1729_vm2, %v1493_v50, -inf }
 0x3f7   :  { %1737 = vmax.xlane.f32.xlu0 %v1736_v52  ;;  %v1496_v53 = vpop.f32.mrb[14].mxu1 }
 0x3f8   :  { %v3132_v54 = vpop.f32.mrb[15].mxu1 }
 0x3fd   :  { %v1539_v55 = vpop.f32.mrb[16].mxu1 }
 0x3fe   :  { %v3137_v56 = vpop.f32.mrb[17].mxu1  ;;  %v1739_v57 = vsel %vm1729_vm2, %v1539_v55, -inf }
 0x3ff   :  { %1740 = vmax.xlane.f32.xlu0 %v1739_v57  ;;  %v1542_v58 = vpop.f32.mrb[18].mxu1 }
 0x400   :  { %v3138_v59 = vpop.f32.mrb[19].mxu1 }
 0x403   :  { %1743 = vmax.xlane.f32.xlu0 %v1742_v60  ;;  %v1092_v60 = vshrl.u32 %v4025_v18, 16 }
 0x405   :  { %v1631_v48 = vpop.f32.mrb[20].mxu1 }
 0x406   :  { %v3149_v61 = vpop.f32.mrb[21].mxu1  ;;  %v1745_v62 = vsel %vm1729_vm2, %v1631_v48, -inf }
 0x407   :  { %1746 = vmax.xlane.f32.xlu1 %v1745_v62  ;;  %v1634_v63 = vpop.f32.mrb[22].mxu1  ;;  %1749 = vmax.xlane.f32.xlu0 %v1748_v47 }
 0x408   :  { %v3150_v1 = vpop.f32.mrb[23].mxu1 }
 0x40d   :  { %v1723_v2 = vpop.f32.mrb[24].mxu1 }
 0x40e   :  { %v3161_v3 = vpop.f32.mrb[25].mxu1  ;;  %v1751_v4 = vsel %vm1729_vm2, %v1723_v2, -inf }
 0x40f   :  { %1752 = vmax.xlane.f32.xlu1 %v1751_v4  ;;  %v1726_v5 = vpop.f32.mrb[26].mxu1 }
 0x410   :  { %v3162_v6 = vpop.f32.mrb[27].mxu1 }
 0x420   :  { %1084 = vrot.lane.b32.xlu1 %v4025_v18, %s3729_s3 }
 0x474   :  { %v1732_v7 = vpop.xlane.xlu0 %1731 }
 0x475   :  { %v1754_v8 = vsub.f32 %v1401_v28, %v1732_v7 }
 0x477   :  { %v1762_v9 = vmul.f32 1.442695, %v1754_v8 }
 0x479   :  { %3358 = vpow2.f32 %v1762_v9 }
 0x47c   :  { %v1735_v10 = vpop.xlane.xlu1 %1734 }
 0x47d   :  { %v1755_v11 = vsub.f32 %v1447_v38, %v1735_v10 }
 0x47f   :  { %v1764_v12 = vmul.f32 1.442695, %v1755_v11 }
 0x481   :  { %3360 = vpow2.f32 %v1764_v12 }
 0x483   :  { %v4195_v13 = vpop.eup %3358 }
 0x484   :  { %v1778_v14 = vsel %vm1729_vm2, %v4195_v13, 0.0  ;;  %v1738_v17 = vpop.xlane.xlu0 %1737 }
 0x485   :  { %1779 = vadd.xlane.f32.xlu0 %v1778_v14  ;;  %v1756_v25 = vsub.f32 %v1493_v50, %v1738_v17 }
 0x487   :  { %v1766_v33 = vmul.f32 1.442695, %v1756_v25 }
 0x48b   :  { %v4199_v15 = vpop.eup %3360 }
 0x48c   :  { %v1781_v16 = vsel %vm1729_vm2, %v4199_v15, 0.0  ;;  %v1741_v19 = vpop.xlane.xlu0 %1740 }
 0x48d   :  { %1782 = vadd.xlane.f32.xlu1 %v1781_v16  ;;  %v1757_v20 = vsub.f32 %v1539_v55, %v1741_v19 }
 0x48f   :  { %v1768_v22 = vmul.f32 1.442695, %v1757_v20 }
 0x490   :  { %v1744_v21 = vpop.xlane.xlu0 %1743 }
 0x491   :  { %v1758_v23 = vsub.f32 %v4180_v34, %v1744_v21  ;;  %3362 = vpow2.f32 %v1768_v22 }
 0x493   :  { %v1770_v28 = vmul.f32 1.442695, %v1758_v23 }
 0x494   :  { %v1747_v24 = vpop.xlane.xlu1 %1746  ;;  %v1750_v30 = vpop.xlane.xlu0 %1749 }
 0x495   :  { %v1759_v29 = vsub.f32 %v1631_v48, %v1747_v24  ;;  %v1760_v35 = vsub.f32 %v4183_v44, %v1750_v30  ;;  %3364 = vpow2.f32 %v1770_v28 }
 0x496   :  { %3366 = vpow2.f32 %v1766_v33 }
 0x497   :  { %v1772_v36 = vmul.f32 1.442695, %v1759_v29  ;;  %v1774_v38 = vmul.f32 1.442695, %v1760_v35 }
 0x499   :  { %3368 = vpow2.f32 %v1772_v36 }
 0x49a   :  { %3370 = vpow2.f32 %v1774_v38 }
 0x49b   :  { %1082 = vrot.lane.b32.xlu0 %v4025_v18, %s3746_s12  ;;  %v4209_v40 = vpop.eup %3362 }
 0x49c   :  { %v1753_v31 = vpop.xlane.xlu1 %1752  ;;  %v1787_v34 = vsel %vm1729_vm2, %v4209_v40, 0.0 }
 0x49d   :  { %v1761_v37 = vsub.f32 %v1723_v2, %v1753_v31 }
 0x49e   :  { %1086 = vrot.lane.b32.xlu1 %v4025_v18, %s3747_s16 }
 0x49f   :  { %v1776_v39 = vmul.f32 1.442695, %v1761_v37  ;;  %v4213_v42 = vpop.eup %3364 }
 0x4a0   :  { %v4215_v43 = vpop.eup %3366  ;;  %v1790_v44 = vsel %vm1729_vm2, %v4213_v42, 0.0  ;;  %v1085_v55 = vpop.permute.xlu1 %1084 }
 0x4a1   :  { %3372 = vpow2.f32 %v1776_v39  ;;  %v1784_v49 = vsel %vm1729_vm2, %v4215_v43, 0.0  ;;  %v1100_v61 = vshrl.u32 %v1085_v55, 16 }
 0x4a3   :  { %v4219_v45 = vpop.eup %3368 }
 0x4a4   :  { %v4221_v46 = vpop.eup %3370  ;;  %v1793_v50 = vsel %vm1729_vm2, %v4219_v45, 0.0 }
 0x4a5   :  { %v1796_v53 = vsel %vm1729_vm2, %v4221_v46, 0.0 }
 0x4ab   :  { %v4227_v51 = vpop.eup %3372 }
 0x4ac   :  { %v1799_v52 = vsel %vm1729_vm2, %v4227_v51, 0.0 }
 0x4ba   :  { %1788 = vadd.xlane.f32.xlu0 %v1787_v34 }
 0x4be   :  { %1791 = vadd.xlane.f32.xlu0 %v1790_v44 }
 0x4c2   :  { %1785 = vadd.xlane.f32.xlu1 %v1784_v49  ;;  %1794 = vadd.xlane.f32.xlu0 %v1793_v50 }
 0x4c6   :  { %1800 = vadd.xlane.f32.xlu0 %v1799_v52  ;;  %1797 = vadd.xlane.f32.xlu1 %v1796_v53 }
 0x512   :  { %v1780_v54 = vpop.xlane.xlu0 %1779 }
 0x513   :  { %3374 = vrcp.f32 %v1780_v54 }
 0x516   :  { %v1083_v56 = vpop.permute.xlu0 %1082 }
 0x517   :  { %v1093_v58 = vshrl.u32 %v1083_v56, 16  ;;  %v1090_v59 = vpack.i.b16 %v1083_v56, %v4025_v18 }
 0x519   :  { %v1094_v63 = vpack.i.b16 %v1093_v58, %v1092_v60  ;;  %v1111_v1 = vrot.slane %v1090_v59, %v4037_v32  ;;  %v1104_v50 = vcombine.high %v1090_v59, %v4035_v27 }
 0x51a   :  { %v1783_v57 = vpop.xlane.xlu1 %1782 }
 0x51b   :  { %v1177_v6 = vrot.slane %v1094_v63, %v4037_v32  ;;  %3376 = vrcp.f32 %v1783_v57  ;;  %v1170_v37 = vcombine.high %v1094_v63, %v4035_v27 }
 0x51d   :  { %v3375_v28 = vpop.eup %3374  ;;  %v1184_v58 = vrot.slane %v1170_v37, %v4037_v32 }
 0x51e   :  { %v1087_v48 = vpop.permute.xlu1 %1086  ;;  %v1810_v36 = vmul.f32 %v3375_v28, %v4195_v13 }
 0x51f   :  { %v1098_v62 = vpack.i.b16 %v1087_v48, %v1085_v55  ;;  %v1101_v47 = vshrl.u32 %v1087_v48, 16 }
 0x521   :  { %v1102_v2 = vpack.i.b16 %v1101_v47, %v1100_v61  ;;  %v1126_v3 = vrot.slane %v1098_v62, %v4037_v32  ;;  %v1119_v38 = vcombine.high %v1098_v62, %v4035_v27  ;;  %v1818_v61 = vpack.c.bf16 %v1810_v36, %v1810_v36 }
 0x523   :  { %v1134_v4 = vcombine.low %v1111_v1, %v1126_v3  ;;  %v1135_v5 = vcombine.high %v1111_v1, %v1126_v3  ;;  %v1192_v7 = vrot.slane %v1102_v2, %v4037_v32  ;;  %v1185_v30 = vcombine.high %v1102_v2, %v4035_v27 }
 0x524   :  { %v1133_v60 = vrot.slane %v1119_v38, %v4037_v32 }
 0x525   :  { %v1142_v8 = vrot.slane %v1134_v4, %v4041_v41  ;;  %v1149_v18 = vrot.slane %v1135_v5, %v4041_v41  ;;  %v1200_v9 = vcombine.low %v1177_v6, %v1192_v7  ;;  %v1201_v10 = vcombine.high %v1177_v6, %v1192_v7  ;;  %v3377_v33 = vpop.eup %3376 }
 0x526   :  { %v1811_v52 = vmul.f32 %v3377_v33, %v4199_v15  ;;  %v1199_v53 = vrot.slane %v1185_v30, %v4037_v32  ;;  %v1118_v15 = vrot.slane %v1104_v50, %v4037_v32 }
 0x527   :  { %v1236_v11 = vcombine.low %v1142_v8, %v1149_v18  ;;  %v2978_v12 = vcombine.high %v1142_v8, %v1149_v18  ;;  %v1208_v14 = vrot.slane %v1200_v9, %v4041_v41  ;;  %v1215_v16 = vrot.slane %v1201_v10, %v4041_v41 }
 0x528   :  { %v1216_v59 = vcombine.low %v1184_v58, %v1199_v53  ;;  %v1217_v62 = vcombine.high %v1184_v58, %v1199_v53  ;;  %v1819_v63 = vpack.c.bf16 %v1811_v52, %v1811_v52  ;;  %v1150_v1 = vcombine.low %v1118_v15, %v1133_v60 }
 0x529   :  { %v1243_v17 = vrot.slane %v1236_v11, %v4037_v32  ;;  %v1251_v19 = vrot.slane %v2978_v12, %v4037_v32  ;;  %v1261_v20 = vcombine.low %v1208_v14, %v1215_v16  ;;  %v2979_v21 = vcombine.high %v1208_v14, %v1215_v16 }
 0x52a   :  { %v1151_v2 = vcombine.high %v1118_v15, %v1133_v60  ;;  %v1224_v4 = vrot.slane %v1216_v59, %v4041_v41  ;;  %v1231_v5 = vrot.slane %v1217_v62, %v4041_v41  ;;  %v1158_v6 = vrot.slane %v1150_v1, %v4041_v41  ;;  %v3333_v1 = vld [vmem:[#allocation11 + $0x18] sm:$0xff]  }
 0x52b   :  { %v1252_v22 = vcombine.low %v1243_v17, %v1251_v19  ;;  %v1268_v23 = vrot.slane %v1261_v20, %v4037_v32  ;;  %v1276_v24 = vrot.slane %v2979_v21, %v4037_v32 }
 0x52c   :  { %v1165_v7 = vrot.slane %v1151_v2, %v4041_v41  ;;  %v1311_v8 = vcombine.low %v1224_v4, %v1231_v5  ;;  %v2981_v18 = vcombine.high %v1224_v4, %v1231_v5  ;;  %v3334_v2 = vld [vmem:[#allocation11 + $0x20] sm:$0xff]  }
 0x52d   :  { %v1259_v25 = vrot.slane %v1252_v22, %v4041_v41  ;;  %v1277_v29 = vcombine.low %v1268_v23, %v1276_v24 }
 0x52e   :  { %v1286_v9 = vcombine.low %v1158_v6, %v1165_v7  ;;  %v2980_v10 = vcombine.high %v1158_v6, %v1165_v7  ;;  %v1318_v11 = vrot.slane %v1311_v8, %v4037_v32  ;;  %v1326_v12 = vrot.slane %v2981_v18, %v4037_v32 }
 0x52f   :  { %v1260_v31 = vcombine.high %v1259_v25, %v3744_v26  ;;  %v1284_v35 = vrot.slane %v1277_v29, %v4041_v41  ;;  %v1339_v34 = vshrl.u32 %v1259_v25, 16 }
 0x530   :  { %v1293_v14 = vrot.slane %v1286_v9, %v4037_v32  ;;  %v1301_v16 = vrot.slane %v2980_v10, %v4037_v32  ;;  %v1327_v19 = vcombine.low %v1318_v11, %v1326_v12 }
 0x531   :  { %v1338_v39 = vpack.i.b16 %v1284_v35, %v1259_v25  ;;  %v1340_v44 = vshrl.u32 %v1284_v35, 16  ;;  %v1285_v49 = vcombine.high %v1284_v35, %v3744_v26  ;;  %v1345_v54 = vshrl.u32 %v1260_v31, 16 }
 0x532   :  { %v1302_v20 = vcombine.low %v1293_v14, %v1301_v16  ;;  %v1334_v22 = vrot.slane %v1327_v19, %v4041_v41 }
 0x533   :  { %v1831_v55 = vsel %vm1829_vm3, %v1338_v39, 0  ;;  %v1341_v13 = vpack.i.b16 %v1340_v44, %v1339_v34  ;;  %v1344_v56 = vpack.i.b16 %v1285_v49, %v1260_v31  ;;  %v1346_v57 = vshrl.u32 %v1285_v49, 16 }
 0x534   :  { %3164 = vmatpush3.bf16.msra.mxu0 %v1831_v55  ;;  %v1309_v23 = vrot.slane %v1302_v20, %v4041_v41  ;;  %v1352_v28 = vshrl.u32 %v1334_v22, 16  ;;  %v1335_v36 = vcombine.high %v1334_v22, %v3744_v26 }
 0x535   :  { %v1877_v48 = vsel %vm1829_vm3, %v1341_v13, 0  ;;  %3175 = vmatprep.subr.bf16.mxu0 %v3743_v0  ;;  %v1347_v27 = vpack.i.b16 %v1346_v57, %v1345_v54  ;;  %v1923_v47 = vsel %vm1829_vm3, %v1344_v56, 0 }
 0x536   :  { %3170 = vmatpush3.bf16.msra.mxu1 %v1877_v48  ;;  %v1351_v29 = vshrl.u32 %v1309_v23, 16  ;;  %v1310_v38 = vcombine.high %v1309_v23, %v3744_v26  ;;  %v1358_v34 = vshrl.u32 %v1335_v36, 16  ;;  %v1350_v53 = vpack.i.b16 %v1334_v22, %v1309_v23 }
 0x537   :  { %3166 = vmatmul.mubr.msk.bf16.vlgmr.msra.gmra.mrb[12].mxu0 %vm1729_vm2, %v1818_v61  ;;  %3181 = vmatprep.subr.bf16.mxu1 %v3743_v0  ;;  %v1969_v3 = vsel %vm1829_vm3, %v1347_v27, 0 }
 0x538   :  { %3176 = vmatpush3.bf16.msra.mxu0 %v1923_v47  ;;  %3177 = vmatprep.mubr.msk.bf16.mxu0 %vm3745_vm0, %v3743_v0  ;;  %v1353_v35 = vpack.i.b16 %v1352_v28, %v1351_v29  ;;  %v1357_v49 = vshrl.u32 %v1310_v38, 16  ;;  %v2015_v60 = vsel %vm1829_vm3, %v1350_v53, 0  ;;  %v1356_v61 = vpack.i.b16 %v1335_v36, %v1310_v38  ;;  %v3330_v47 = vld [vmem:[#allocation11] sm:$0xff]  }
 0x539   :  { %3172 = vmatmul.mubr.msk.bf16.vlgmr.msra.gmra.mrb[28].mxu1 %vm1729_vm2, %v1819_v63  ;;  %3187 = vmatprep.subr.bf16.mxu0 %v3743_v0  ;;  %v3331_v63 = vld [vmem:[#allocation11 + $0x8] sm:$0xff]  }
 0x53a   :  { %3182 = vmatpush3.bf16.msra.mxu1 %v1969_v3  ;;  %3183 = vmatprep.mubr.msk.bf16.mxu1 %vm3745_vm0, %v3743_v0  ;;  %v2061_v39 = vsel %vm1829_vm3, %v1353_v35, 0  ;;  %v1359_v55 = vpack.i.b16 %v1358_v34, %v1357_v49  ;;  %v3335_v3 = vld [vmem:[#allocation11 + $0x28] sm:$0xff]  }
 0x53b   :  { %3193 = vmatprep.subr.bf16.mxu1 %v3743_v0 }
 0x53c   :  { %v2153_v48 = vsel %vm1829_vm3, %v1359_v55, 0 }
 0x547   :  { %v1789_v17 = vpop.xlane.xlu0 %1788 }
 0x548   :  { %3378 = vrcp.f32 %v1789_v17 }
 0x54b   :  { %v1792_v21 = vpop.xlane.xlu0 %1791 }
 0x54f   :  { %v1786_v24 = vpop.xlane.xlu1 %1785  ;;  %v1795_v25 = vpop.xlane.xlu0 %1794 }
 0x550   :  { %3380 = vrcp.f32 %v1786_v24 }
 0x551   :  { %3382 = vrcp.f32 %v1795_v25 }
 0x552   :  { %v3379_v30 = vpop.eup %3378  ;;  %3384 = vrcp.f32 %v1792_v21 }
 0x553   :  { %v1813_v31 = vmul.f32 %v3379_v30, %v4209_v40  ;;  %v1801_v33 = vpop.xlane.xlu0 %1800  ;;  %v1798_v44 = vpop.xlane.xlu1 %1797 }
 0x554   :  { %3386 = vrcp.f32 %v1801_v33 }
 0x555   :  { %v1821_v37 = vpack.c.bf16 %v1813_v31, %v1813_v31  ;;  %3388 = vrcp.f32 %v1798_v44 }
 0x557   :  { %3184 = vmatmul.mubr.msk.bf16.vlgmr.msra.gmra.mrb[32].mxu1 %vm1729_vm2, %v1821_v37 }
 0x558   :  { %3194 = vmatpush3.bf16.msra.mxu1 %v2061_v39  ;;  %3195 = vmatprep.mubr.msk.bf16.mxu1 %vm3745_vm0, %v3743_v0 }
 0x559   :  { %3205 = vmatprep.subr.bf16.mxu1 %v3743_v0 }
 0x55a   :  { %v3381_v40 = vpop.eup %3380 }
 0x55b   :  { %v3383_v50 = vpop.eup %3382  ;;  %v1812_v52 = vmul.f32 %v3381_v40, %v4215_v43 }
 0x55c   :  { %v1815_v54 = vmul.f32 %v3383_v50, %v4219_v45  ;;  %v3385_v56 = vpop.eup %3384 }
 0x55d   :  { %v1820_v13 = vpack.c.bf16 %v1812_v52, %v1812_v52  ;;  %v1814_v43 = vmul.f32 %v3385_v56, %v4213_v42  ;;  %v2107_v42 = vsel %vm1829_vm3, %v1356_v61, 0 }
 0x55e   :  { %v1823_v57 = vpack.c.bf16 %v1815_v54, %v1815_v54  ;;  %v3387_v58 = vpop.eup %3386 }
 0x55f   :  { %3178 = vmatmul.mubr.msk.bf16.vlgmr.msra.gmra.mrb[16].mxu0 %vm1729_vm2, %v1820_v13  ;;  %v1817_v45 = vmul.f32 %v3387_v58, %v4227_v51  ;;  %v1822_v27 = vpack.c.bf16 %v1814_v43, %v1814_v43  ;;  %v3389_v15 = vpop.eup %3388 }
 0x560   :  { %3188 = vmatpush3.bf16.msra.mxu0 %v2015_v60  ;;  %3196 = vmatmul.mubr.msk.bf16.vlgmr.msra.gmra.mrb[36].mxu1 %vm1729_vm2, %v1823_v57  ;;  %v1816_v51 = vmul.f32 %v3389_v15, %v4221_v46  ;;  %v3332_v46 = vld [vmem:[#allocation11 + $0x10] sm:$0xff]  }
 0x561   :  { %3206 = vmatpush3.bf16.msra.mxu1 %v2153_v48  ;;  %3189 = vmatprep.mubr.msk.bf16.mxu0 %vm3745_vm0, %v3743_v0  ;;  %v1825_v59 = vpack.c.bf16 %v1817_v45, %v1817_v45 }
 0x562   :  { %3199 = vmatprep.subr.bf16.mxu0 %v3743_v0  ;;  %3207 = vmatprep.mubr.msk.bf16.mxu1 %vm3745_vm0, %v3743_v0  ;;  %v1824_v62 = vpack.c.bf16 %v1816_v51, %v1816_v51 }
 0x563   :  { %3231 = vmatprep.subr.bf16.mxu1 %v3743_v0 }
 0x567   :  { %3190 = vmatmul.mubr.msk.bf16.vlgmr.msra.gmra.mrb[20].mxu0 %vm1729_vm2, %v1822_v27 }
 0x568   :  { %3200 = vmatpush3.bf16.msra.mxu0 %v2107_v42  ;;  %3208 = vmatmul.mubr.msk.bf16.vlgmr.msra.gmra.mrb[40].mxu1 %vm1729_vm2, %v1825_v59 }
 0x569   :  { %3201 = vmatprep.mubr.msk.bf16.mxu0 %vm3745_vm0, %v3743_v0  ;;  %3211 = vmatprep.subr.bf16.mxu0 %v3743_v0 }
 0x56a   :  { %3247 = vmatprep.mubr.msk.bf16.mxu1 %vm3745_vm0, %v3743_v0 }
 0x56f   :  { %3202 = vmatmul.mubr.msk.bf16.vlgmr.msra.gmra.mrb[24].mxu0 %vm1729_vm2, %v1824_v62 }
 0x570   :  { %3227 = vmatprep.mubr.msk.bf16.mxu0 %vm3745_vm0, %v3743_v0  ;;  %3212 = vmatpush3.bf16.msra.mxu0 %v3330_v47 }
 0x571   :  { %3213 = vmatprep.subr.bf16.mxu0 %v3743_v0 }
 0x574   :  { %3214 = vmatpush3.bf16.msra.mxu0 %v3331_v63 }
 0x575   :  { %3215 = vmatprep.subr.bf16.mxu0 %v3743_v0 }
 0x578   :  { %3216 = vmatpush3.bf16.msra.mxu0 %v3332_v46 }
 0x579   :  { %3217 = vmatprep.subr.bf16.mxu0 %v3743_v0 }
 0x57c   :  { %3218 = vmatpush3.bf16.msra.mxu0 %v3333_v1 }
 0x57d   :  { %3219 = vmatprep.subr.bf16.mxu0 %v3743_v0 }
 0x580   :  { %3220 = vmatpush3.bf16.msra.mxu0 %v3334_v2 }
 0x581   :  { %3221 = vmatprep.subr.bf16.mxu0 %v3743_v0 }
 0x584   :  { %3222 = vmatpush3.bf16.msra.mxu0 %v3335_v3 }
 0x585   :  { %3223 = vmatprep.subr.bf16.mxu0 %v3743_v0 }
 0x60a   :  { %v1867_v4 = vpop.f32.mrb[12].mxu0 }
 0x60b   :  { %v3167_v5 = vpop.f32.mrb[13].mxu0  ;;  %v2195_v24 = vpack.c.bf16 %v1867_v4, %v1867_v4 }
 0x60c   :  { %v1870_v6 = vpop.f32.mrb[14].mxu0  ;;  %v1913_v7 = vpop.f32.mrb[28].mxu1 }
 0x60d   :  { %v3168_v8 = vpop.f32.mrb[15].mxu0  ;;  %v3173_v18 = vpop.f32.mrb[29].mxu1  ;;  %v2229_v11 = vpack.c.bf16 %v1913_v7, %v1913_v7  ;;  %v2202_v39 = vrot.slane %v2195_v24, %v4037_v32 }
 0x60e   :  { %v1916_v9 = vpop.f32.mrb[30].mxu1 }
 0x60f   :  { %v3174_v10 = vpop.f32.mrb[31].mxu1  ;;  %v2236_v19 = vrot.slane %v2229_v11, %v4037_v32 }
 0x62a   :  { %v2005_v12 = vpop.f32.mrb[32].mxu1 }
 0x62b   :  { %v2237_v14 = vpack.c.bf16 %v2005_v12, %v2005_v12  ;;  %v3185_v16 = vpop.f32.mrb[33].mxu1 }
 0x62c   :  { %v2008_v17 = vpop.f32.mrb[34].mxu1 }
 0x62d   :  { %v2244_v20 = vrot.slane %v2237_v14, %v4037_v32  ;;  %v3186_v21 = vpop.f32.mrb[35].mxu1 }
 0x62f   :  { %v2245_v22 = vcombine.low %v2236_v19, %v2244_v20  ;;  %v2246_v23 = vcombine.high %v2236_v19, %v2244_v20 }
 0x631   :  { %v2253_v28 = vrot.slane %v2245_v22, %v4041_v41  ;;  %v2260_v29 = vrot.slane %v2246_v23, %v4041_v41 }
 0x632   :  { %v1959_v25 = vpop.f32.mrb[16].mxu0 }
 0x633   :  { %v2097_v30 = vpop.f32.mrb[36].mxu1  ;;  %v3179_v31 = vpop.f32.mrb[17].mxu0  ;;  %v2203_v33 = vpack.c.bf16 %v1959_v25, %v1959_v25  ;;  %v2261_v40 = vcombine.high %v2253_v28, %v3744_v26  ;;  %v2262_v49 = vcombine.high %v2260_v29, %v3744_v26  ;;  %v2336_v56 = vshrl.u32 %v2253_v28, 16 }
 0x634   :  { %v3197_v35 = vpop.f32.mrb[37].mxu1  ;;  %v1962_v36 = vpop.f32.mrb[18].mxu0  ;;  %v2297_v53 = vpack.c.bf16 %v2097_v30, %v2097_v30  ;;  %v2352_v58 = vshrl.u32 %v2260_v29, 16 }
 0x635   :  { %v2100_v37 = vpop.f32.mrb[38].mxu1  ;;  %v3180_v38 = vpop.f32.mrb[19].mxu0  ;;  %v2210_v34 = vrot.slane %v2203_v33, %v4037_v32  ;;  %v2344_v57 = vshrl.u32 %v2261_v40, 16  ;;  %v2360_v60 = vshrl.u32 %v2262_v49, 16 }
 0x636   :  { %v3198_v44 = vpop.f32.mrb[39].mxu1  ;;  %v2304_v47 = vrot.slane %v2297_v53, %v4037_v32 }
 0x637   :  { %v2211_v50 = vcombine.low %v2202_v39, %v2210_v34  ;;  %v2212_v52 = vcombine.high %v2202_v39, %v2210_v34 }
 0x639   :  { %v2219_v54 = vrot.slane %v2211_v50, %v4041_v41  ;;  %v2226_v55 = vrot.slane %v2212_v52, %v4041_v41 }
 0x63a   :  { %v2051_v13 = vpop.f32.mrb[20].mxu0 }
 0x63b   :  { %v2189_v48 = vpop.f32.mrb[40].mxu1  ;;  %v3191_v43 = vpop.f32.mrb[21].mxu0  ;;  %v2227_v45 = vcombine.high %v2219_v54, %v3744_v26  ;;  %v2228_v61 = vcombine.high %v2226_v55, %v3744_v26  ;;  %v2333_v27 = vpack.i.b16 %v2253_v28, %v2219_v54  ;;  %v2335_v15 = vshrl.u32 %v2219_v54, 16 }
 0x63c   :  { %v3209_v59 = vpop.f32.mrb[41].mxu1  ;;  %v2054_v42 = vpop.f32.mrb[22].mxu0  ;;  %v2349_v51 = vpack.i.b16 %v2260_v29, %v2226_v55  ;;  %v2351_v62 = vshrl.u32 %v2226_v55, 16  ;;  %v2305_v63 = vpack.c.bf16 %v2189_v48, %v2189_v48  ;;  %v2263_v17 = vpack.c.bf16 %v2051_v13, %v2051_v13 }
 0x63d   :  { %v2192_v46 = vpop.f32.mrb[42].mxu1  ;;  %v3192_v1 = vpop.f32.mrb[23].mxu0  ;;  %v2337_v2 = vpack.i.b16 %v2336_v56, %v2335_v15  ;;  %v2341_v3 = vpack.i.b16 %v2261_v40, %v2227_v45  ;;  %v2343_v4 = vshrl.u32 %v2227_v45, 16  ;;  %v2357_v5 = vpack.i.b16 %v2262_v49, %v2228_v61 }
 0x63e   :  { %v3210_v6 = vpop.f32.mrb[43].mxu1  ;;  %v2353_v7 = vpack.i.b16 %v2352_v58, %v2351_v62  ;;  %v2359_v8 = vshrl.u32 %v2228_v61, 16  ;;  %v2312_v18 = vrot.slane %v2305_v63, %v4037_v32  ;;  %v2395_v9 = vcombine.low %v2333_v27, %v2349_v51  ;;  %v3336_v1 = vld [vmem:[#allocation11 + $0x30] sm:$0xff]  }
 0x63f   :  { %v2345_v10 = vpack.i.b16 %v2344_v57, %v2343_v4  ;;  %v2403_v11 = vcombine.low %v2341_v3, %v2357_v5  ;;  %v2270_v33 = vrot.slane %v2263_v17, %v4037_v32  ;;  %3224 = vmatpush3.bf16.msra.mxu0 %v3336_v1  ;;  %v3337_v5 = vld [vmem:[#allocation11 + $0x38] sm:$0xff]  }
 0x640   :  { %v2313_v12 = vcombine.low %v2304_v47, %v2312_v18  ;;  %v2314_v14 = vcombine.high %v2304_v47, %v2312_v18  ;;  %v2361_v16 = vpack.i.b16 %v2360_v60, %v2359_v8  ;;  %v2402_v20 = vrot.slane %v2395_v9, %v4037_v32  ;;  %3225 = vmatprep.subr.bf16.mxu0 %v3743_v0 }
 0x641   :  { %v2410_v21 = vrot.slane %v2403_v11, %v4037_v32  ;;  %v2445_v22 = vcombine.low %v2337_v2, %v2353_v7 }
 0x642   :  { %v2143_v19 = vpop.f32.mrb[24].mxu0  ;;  %v2453_v25 = vcombine.low %v2345_v10, %v2361_v16  ;;  %v2321_v30 = vrot.slane %v2313_v12, %v4041_v41  ;;  %v2328_v38 = vrot.slane %v2314_v14, %v4041_v41 }
 0x643   :  { %v2271_v23 = vpack.c.bf16 %v2143_v19, %v2143_v19  ;;  %v3203_v24 = vpop.f32.mrb[25].mxu0  ;;  %v2427_v29 = vcombine.low %v2402_v20, %v2410_v21  ;;  %v2452_v36 = vrot.slane %v2445_v22, %v4037_v32  ;;  %3226 = vmatpush3.bf16.msra.mxu0 %v3337_v5 }
 0x644   :  { %v2146_v28 = vpop.f32.mrb[26].mxu0  ;;  %v2460_v37 = vrot.slane %v2453_v25, %v4037_v32  ;;  %v2329_v40 = vcombine.high %v2321_v30, %v3744_v26  ;;  %v2330_v52 = vcombine.high %v2328_v38, %v3744_v26  ;;  %v2368_v53 = vshrl.u32 %v2321_v30, 16  ;;  %3251 = vmatprep.subr.bf16.mxu0 %v3743_v0 }
 0x645   :  { %v3204_v31 = vpop.f32.mrb[27].mxu0  ;;  %v2278_v35 = vrot.slane %v2271_v23, %v4037_v32  ;;  %v2384_v58 = vshrl.u32 %v2328_v38, 16  ;;  %v2434_v8 = vrot.slane %v2427_v29, %v4041_v41 }
 0x646   :  { %v2477_v44 = vcombine.low %v2452_v36, %v2460_v37  ;;  %v2376_v57 = vshrl.u32 %v2329_v40, 16  ;;  %v2392_v15 = vshrl.u32 %v2330_v52, 16 }
 0x647   :  { %v2279_v39 = vcombine.low %v2270_v33, %v2278_v35  ;;  %v2280_v34 = vcombine.high %v2270_v33, %v2278_v35  ;;  %v2998_v35 = vld [vmem:[#allocation13] ss:$0 sm:$0xff] }
 0x648   :  { %v2484_v12 = vrot.slane %v2477_v44, %v4041_v41 }
 0x649   :  { %v2287_v49 = vrot.slane %v2279_v39, %v4041_v41  ;;  %v2294_v50 = vrot.slane %v2280_v34, %v4041_v41  ;;  %v3398_v34 = vld [vmem:[#allocation2] sm:$0xff] }
 0x64b   :  { %v2295_v54 = vcombine.high %v2287_v49, %v3744_v26  ;;  %v2296_v55 = vcombine.high %v2294_v50, %v3744_v26  ;;  %v2365_v13 = vpack.i.b16 %v2321_v30, %v2287_v49  ;;  %v2367_v56 = vshrl.u32 %v2287_v49, 16 }
 0x64c   :  { %v2381_v60 = vpack.i.b16 %v2328_v38, %v2294_v50  ;;  %v2383_v48 = vshrl.u32 %v2294_v50, 16  ;;  %v3399_v50 = vld [vmem:[#allocation2 + $0x8] sm:$0xff] }
 0x64d   :  { %v2369_v43 = vpack.i.b16 %v2368_v53, %v2367_v56  ;;  %v2373_v45 = vpack.i.b16 %v2329_v40, %v2295_v54  ;;  %v2375_v61 = vshrl.u32 %v2295_v54, 16  ;;  %v2389_v27 = vpack.i.b16 %v2330_v52, %v2296_v55  ;;  %v3340_v56 = vld [vmem:[#allocation17 + $0x10] sm:$0xff]  }
 0x64e   :  { %v2385_v59 = vpack.i.b16 %v2384_v58, %v2383_v48  ;;  %v2391_v42 = vshrl.u32 %v2296_v55, 16  ;;  %v2411_v51 = vcombine.low %v2365_v13, %v2381_v60  ;;  %v3338_v55 = vld [vmem:[#allocation17] sm:$0xff]   ;;  %v3339_v13 = vld [vmem:[#allocation17 + $0x8] sm:$0xff]   ;;  %v3344_v48 = vld [vmem:[#allocation17 + $0x30] sm:$0xff]  }
 0x64f   :  { %v2377_v62 = vpack.i.b16 %v2376_v57, %v2375_v61  ;;  %v2419_v47 = vcombine.low %v2373_v45, %v2389_v27  ;;  %3232 = vmatpush3.bf16.msra.mxu1 %v3338_v55  ;;  %v3341_v57 = vld [vmem:[#allocation17 + $0x18] sm:$0xff]   ;;  %v3342_v58 = vld [vmem:[#allocation17 + $0x20] sm:$0xff]   ;;  %v3343_v60 = vld [vmem:[#allocation17 + $0x28] sm:$0xff]  }
 0x650   :  { %v2393_v63 = vpack.i.b16 %v2392_v15, %v2391_v42  ;;  %v2461_v46 = vcombine.low %v2369_v43, %v2385_v59  ;;  %v2418_v26 = vrot.slane %v2411_v51, %v4037_v32  ;;  %3233 = vmatprep.subr.bf16.mxu1 %v3743_v0  ;;  %v3346_v43 = vld [vmem:[#allocation20] sm:$0xff]   ;;  %v3345_v45 = vld [vmem:[#allocation17 + $0x38] sm:$0xff]   ;;  %v3347_v61 = vld [vmem:[#allocation20 + $0x8] sm:$0xff]  }
 0x651   :  { %v2426_v2 = vrot.slane %v2419_v47, %v4037_v32 }
 0x652   :  { %v2469_v3 = vcombine.low %v2377_v62, %v2393_v63  ;;  %v2468_v6 = vrot.slane %v2461_v46, %v4037_v32 }
 0x653   :  { %v2435_v4 = vcombine.low %v2418_v26, %v2426_v2  ;;  %3234 = vmatpush3.bf16.msra.mxu1 %v3339_v13 }
 0x654   :  { %v2476_v7 = vrot.slane %v2469_v3, %v4037_v32  ;;  %3235 = vmatprep.subr.bf16.mxu1 %v3743_v0 }
 0x655   :  { %v2442_v18 = vrot.slane %v2435_v4, %v4041_v41 }
 0x656   :  { %v2485_v9 = vcombine.low %v2468_v6, %v2476_v7  ;;  %v3007_v7 = vld [vmem:[#allocation14] ss:$0 sm:$0xff] }
 0x657   :  { %v2444_v10 = vcombine.high %v2434_v8, %v2442_v18  ;;  %v2443_v11 = vcombine.low %v2434_v8, %v2442_v18  ;;  %3236 = vmatpush3.bf16.msra.mxu1 %v3340_v56 }
 0x658   :  { %v2492_v14 = vrot.slane %v2485_v9, %v4041_v41  ;;  %3237 = vmatprep.subr.bf16.mxu1 %v3743_v0 }
 0x659   :  { %v2504_v19 = vshrl.u32 %v2444_v10, 16  ;;  %v2498_v20 = vshrl.u32 %v2443_v11, 16 }
 0x65a   :  { %v2493_v16 = vcombine.low %v2484_v12, %v2492_v14  ;;  %v2494_v17 = vcombine.high %v2484_v12, %v2492_v14  ;;  %v3008_v12 = vld [vmem:[#allocation16] ss:$0 sm:$0xff] }
 0x65b   :  { %3238 = vmatpush3.bf16.msra.mxu1 %v3341_v57 }
 0x65c   :  { %v2503_v21 = vpack.i.b16 %v2494_v17, %v2444_v10  ;;  %v2505_v32 = vshrl.u32 %v2494_v17, 16  ;;  %v2499_v22 = vshrl.u32 %v2493_v16, 16  ;;  %v2497_v23 = vpack.i.b16 %v2493_v16, %v2443_v11  ;;  %3239 = vmatprep.subr.bf16.mxu1 %v3743_v0 }
 0x65e   :  { %2509 = vrot.lane.b32.xlu0 %v2503_v21, %s3729_s3  ;;  %v2500_v24 = vpack.i.b16 %v2499_v22, %v2498_v20  ;;  %v2506_v25 = vpack.i.b16 %v2505_v32, %v2504_v19  ;;  %v3348_v20 = vld [vmem:[#allocation20 + $0x10] sm:$0xff]   ;;  %v3349_v21 = vld [vmem:[#allocation20 + $0x18] sm:$0xff]   ;;  %v3350_v32 = vld [vmem:[#allocation20 + $0x20] sm:$0xff]   ;;  %s3750_s3 = smov [#allocation23]  }
 0x65f   :  { %3240 = vmatpush3.bf16.msra.mxu1 %v3342_v58  ;;  %v3351_v22 = vld [vmem:[#allocation20 + $0x28] sm:$0xff]   ;;  %s2926_s26 = sshll.u32 %s3750_s3, 4  ;;  %s2927_s26 = int_to_ptr.vmem [resolvable:$true] %s2926_s26 }
 0x660   :  { %2507 = vrot.lane.b32.xlu1 %v2500_v24, %s3747_s16  ;;  %3241 = vmatprep.subr.bf16.mxu1 %v3743_v0  ;;  %v3353_v24 = vld [vmem:[#allocation20 + $0x38] sm:$0xff]   ;;  %s3686_s17 = scalar_lea.vmem %s2927_s26, 256  ;;  %p3691_p7 = scmp.lt.s32.totalorder %s2927_s26, %s2927_s26 }
 0x661   :  { %p3687_p6 = scmp.ne.s32.totalorder %s2927_s26, %s3686_s17  ;;  %p3692_p8 = scmp.lt.s32.totalorder %s3686_s17, %s3686_s17 }
 0x663   :  { %3242 = vmatpush3.bf16.msra.mxu1 %v3343_v60  ;;  %p3693_p9 = por %p3692_p8, %p3691_p7 }
 0x664   :  { %2511 = vrot.lane.b32.xlu1 %v2506_v25, %s3746_s12  ;;  %3243 = vmatprep.subr.bf16.mxu1 %v3743_v0  ;;  %v3009_v25 = vld [vmem:[#allocation19] ss:$0 sm:$0xff] }
 0x665   :  { %p3694_p10 = pnand %p3693_p9, %p3687_p6 }
 0x667   :  { %3244 = vmatpush3.bf16.msra.mxu1 %v3344_v48 }
 0x668   :  { %3245 = vmatprep.subr.bf16.mxu1 %v3743_v0 }
 0x66b   :  { %3246 = vmatpush3.bf16.msra.mxu1 %v3345_v45 }
 0x6d0   :  { %v2510_v41 = vpop.permute.xlu0 %2509 }
 0x6d2   :  { %v2508_v28 = vpop.permute.xlu1 %2507 }
 0x6d3   :  { %v2515_v29 = vsel %vm1360_vm1, %v2497_v23, %v2508_v28  ;;  %v3352_v23 = vld [vmem:[#allocation20 + $0x30] sm:$0xff]  }
 0x6d4   :  { %v2518_v31 = vsel %vm2516_vm4, %v2515_v29, %v2510_v41 }
 0x6d6   :  { %v2512_v30 = vpop.permute.xlu1 %2511 }
 0x6d7   :  { %v2521_v33 = vsel %vm2519_vm5, %v2518_v31, %v2512_v30 }
 0x6d8   :  { %3228 = vmatmul.mubr.bf16.vlgmr.msra.gmra.mrb[28].mxu0 %v2521_v33 }
 0x6d9   :  { %3267 = vmatprep.mubr.msk.bf16.mxu0 %vm3745_vm0, %v3743_v0  ;;  %3252 = vmatpush3.bf16.msra.mxu0 %v3346_v43 }
 0x6da   :  { %3253 = vmatprep.subr.bf16.mxu0 %v3743_v0 }
 0x6dd   :  { %3254 = vmatpush3.bf16.msra.mxu0 %v3347_v61 }
 0x6de   :  { %3255 = vmatprep.subr.bf16.mxu0 %v3743_v0 }
 0x6e1   :  { %3256 = vmatpush3.bf16.msra.mxu0 %v3348_v20 }
 0x6e2   :  { %3257 = vmatprep.subr.bf16.mxu0 %v3743_v0 }
 0x6e5   :  { %3258 = vmatpush3.bf16.msra.mxu0 %v3349_v21 }
 0x6e6   :  { %3259 = vmatprep.subr.bf16.mxu0 %v3743_v0 }
 0x6e9   :  { %3260 = vmatpush3.bf16.msra.mxu0 %v3350_v32 }
 0x6ea   :  { %3261 = vmatprep.subr.bf16.mxu0 %v3743_v0 }
 0x6ed   :  { %3262 = vmatpush3.bf16.msra.mxu0 %v3351_v22 }
 0x6ee   :  { %3263 = vmatprep.subr.bf16.mxu0 %v3743_v0 }
 0x6f1   :  { %3264 = vmatpush3.bf16.msra.mxu0 %v3352_v23 }
 0x6f2   :  { %3265 = vmatprep.subr.bf16.mxu0 %v3743_v0 }
 0x6f5   :  { %3266 = vmatpush3.bf16.msra.mxu0 %v3353_v24 }
 0x7ab   :  { %v2628_v36 = vpop.f32.mrb[28].mxu0 }
 0x7ac   :  { %v2629_v37 = vadd.f32 %v2998_v35, %v2628_v36  ;;  %v3229_v38 = vpop.f32.mrb[29].mxu0 }
 0x7ad   :  { %v2631_v39 = vpop.f32.mrb[30].mxu0 }
 0x7ae   :  { %v4369_v44 = vadd.f32 %v3398_v34, %v2629_v37  ;;  %v2632_v40 = vadd.f32 %v2998_v35, %v2631_v39  ;;  %v3230_v49 = vpop.f32.mrb[31].mxu0 }
 0x7b0   :  { %v4371_v52 = vadd.f32 %v3399_v50, %v2632_v40  ;;  %2639 = vadd.xlane.f32.xlu1 %v4369_v44  ;;  %v2645_v54 = vmul.f32 %v4369_v44, %v4369_v44 }
 0x7b2   :  { %2641 = vadd.xlane.f32.xlu0 %v4371_v52  ;;  %v2646_v53 = vmul.f32 %v4371_v52, %v4371_v52 }
 0x7b4   :  { %2649 = vadd.xlane.f32.xlu1 %v2646_v53 }
 0x7b6   :  { %2647 = vadd.xlane.f32.xlu0 %v2645_v54  ;;  %v3018_v54 = vld [vmem:[#allocation22] ss:$0 sm:$0xff] }
 0x83d   :  { %v2640_v27 = vpop.xlane.xlu1 %2639 }
 0x83e   :  { %v2643_v59 = vmul.f32 0.03125, %v2640_v27 }
 0x83f   :  { %v2642_v15 = vpop.xlane.xlu0 %2641 }
 0x840   :  { %v2644_v42 = vmul.f32 0.03125, %v2642_v15  ;;  %v2653_v46 = vmul.f32 %v2643_v59, %v2643_v59  ;;  %v2657_v8 = vsub.f32 %v4369_v44, %v2643_v59 }
 0x841   :  { %v2650_v51 = vpop.xlane.xlu1 %2649 }
 0x842   :  { %v2654_v62 = vmul.f32 %v2644_v42, %v2644_v42  ;;  %v2652_v47 = vmul.f32 0.03125, %v2650_v51  ;;  %v2658_v5 = vsub.f32 %v4371_v52, %v2644_v42 }
 0x843   :  { %v2648_v63 = vpop.xlane.xlu0 %2647 }
 0x844   :  { %v2656_v1 = vsub.f32 %v2652_v47, %v2654_v62  ;;  %v2651_v26 = vmul.f32 0.03125, %v2648_v63 }
 0x846   :  { %v2660_v2 = vadd.f32 1e-05, %v2656_v1  ;;  %v2655_v3 = vsub.f32 %v2651_v26, %v2653_v46 }
 0x848   :  { %3390 = vrsqrt.f32 %v2660_v2  ;;  %v2659_v4 = vadd.f32 1e-05, %v2655_v3 }
 0x84a   :  { %3392 = vrsqrt.f32 %v2659_v4 }
 0x852   :  { %v3391_v6 = vpop.eup %3390 }
 0x853   :  { %v2664_v18 = vmul.f32 %v3391_v6, %v2658_v5 }
 0x854   :  { %v3393_v9 = vpop.eup %3392 }
 0x855   :  { %v2663_v10 = vmul.f32 %v3393_v9, %v2657_v8  ;;  %v2672_v11 = vmul.f32 %v3007_v7, %v2664_v18 }
 0x857   :  { %v2671_v14 = vmul.f32 %v3007_v7, %v2663_v10  ;;  %v2680_v17 = vadd.f32 %v3008_v12, %v2672_v11 }
 0x859   :  { %v2679_v16 = vadd.f32 %v3008_v12, %v2671_v14 }
 0x85b   :  { %v2681_v19 = vpack.c.bf16 %v2680_v17, %v2679_v16 }
 0x85d   :  { %3248 = vmatmul.mubr.bf16.vlgmr.msra.gmra.mrb[44].mxu1 %v2681_v19 }
 0x930   :  { %v2787_v28 = vpop.f32.mrb[44].mxu1 }
 0x931   :  { %v2788_v29 = vadd.f32 %v3009_v25, %v2787_v28  ;;  %v3249_v41 = vpop.f32.mrb[45].mxu1 }
 0x932   :  { %v2790_v30 = vpop.f32.mrb[46].mxu1 }
 0x933   :  { %v2796_v31 = vmul.f32 0.70710677, %v2788_v29  ;;  %v2791_v33 = vadd.f32 %v3009_v25, %v2790_v30  ;;  %v3250_v35 = vpop.f32.mrb[47].mxu1  ;;  %v2794_v34 = vmul.f32 0.5, %v2788_v29 }
 0x935   :  { %3394 = verf.f32 %v2796_v31  ;;  %v2797_v36 = vmul.f32 0.70710677, %v2791_v33  ;;  %v2795_v40 = vmul.f32 0.5, %v2791_v33 }
 0x937   :  { %3396 = verf.f32 %v2797_v36 }
 0x93f   :  { %v3395_v37 = vpop.eup %3394 }
 0x940   :  { %v2800_v38 = vadd.f32 1.0, %v3395_v37 }
 0x941   :  { %v3397_v39 = vpop.eup %3396 }
 0x942   :  { %v2801_v49 = vadd.f32 1.0, %v3397_v39  ;;  %v2802_v50 = vmul.f32 %v2800_v38, %v2794_v34 }
 0x944   :  { %v2803_v0 = vmul.f32 %v2801_v49, %v2795_v40 }
 0x946   :  { %v2804_v53 = vpack.c.bf16 %v2803_v0, %v2802_v50 }
 0x948   :  { %3268 = vmatmul.mubr.bf16.vlgmr.msra.gmra.mrb[32].mxu0 %v2804_v53 }
 0xa1b   :  { %v2910_v55 = vpop.f32.mrb[32].mxu0 }
 0xa1c   :  { %v2911_v13 = vadd.f32 %v3018_v54, %v2910_v55  ;;  %v3269_v56 = vpop.f32.mrb[33].mxu0 }
 0xa1d   :  { %v2913_v57 = vpop.f32.mrb[34].mxu0 }
 0xa1e   :  { %v2917_v58 = vadd.f32 %v2911_v13, %v4369_v44  ;;  %v2914_v60 = vadd.f32 %v3018_v54, %v2913_v57  ;;  %v3270_v48 = vpop.f32.mrb[35].mxu0 }
 0xa20   :  { %2919 = vst [vmem:[#allocation23] sm:$0xff] %v2917_v58  ;;  %v2918_v43 = vadd.f32 %v2914_v60, %v4371_v52 }
 0xa22   :  { %2920 = vst [vmem:[#allocation23 + $0x8] sm:$0xff] %v2918_v43 }
 0xa23   :  { %3697 = shalt.err (!%p3694_p10)
}
 0xa24   :  { %s3698_s18 = scalar_lea.hbm %s4425_s13, 256 }
 0xa25   :  { %p3699_p11 = scmp.ne.s32.totalorder %s4425_s13, %s3698_s18  ;;  %p3702_p12 = scmp.lt.u32.totalorder %s3698_s18, %s4425_s13 }
 0xa27   :  { %p3704_p13 = pnand %p3702_p12, %p3699_p11 }
 0xa29   :  { %3707 = shalt.err (!%p3704_p13)
}
 0xa2a   :  { %2932 = dma.vmem_to_hbm [thread:$0]  %s2927_s26, 256, %s4425_s13, [#allocation4], %s3735_s11, %s3735_s11, %s3736_s28  }
 0xa2b   :  { %3722 = dma.done.wait [#allocation4], 256  }
 0xa2c   :  { %3723 = vsyncadd [#allocation4], 4294967040 }
 0xa2d   :  { %2936 = vsyncpa [#allocation3], 1 }
 0xa2e   :  { %2937 = vsyncpa [#allocation6], 1 }
 0xa2f   :  { %2938 = vsyncpa [#allocation9], 1 }
 0xa30   :  { %2939 = vsyncpa [#allocation12], 1 }
 0xa31   :  { %2940 = vsyncpa [#allocation15], 1 }
 0xa32   :  { %2941 = vsyncpa [#allocation18], 1 }
 0xa33   :  { %2942 = vsyncpa [#allocation21], 1 }
 0xa34   :  { %2943 = vsyncpa [#allocation4], 1 }

</bundles_post_ra>
